<compile_context>
chip_gen: v7x
topology: tpu7x:2x2x1
jax: 0.10.0
libtpu: 0.0.40
codegen_flags: <defaults>
</compile_context>

<pallas_src>
import functools

import jax
import jax.numpy as jnp
import numpy as np
from jax.experimental import pallas as pl
from jax.experimental.pallas import tpu as pltpu


# --------------------------------------------------------------------------
# Fused Pallas kernel: num_layers GNN layers + (optional) edge-mask linear
# --------------------------------------------------------------------------
def fused_gnn_kernel(node_ref, edge_ref, avg_ref, p2_ref,
                     wx_ref, ws2_ref, we_ref, wm2_ref, wmf_ref,
                     wn2_ref, wn3_ref, wsh_ref, we2_ref, we3_ref,
                     wmask_ref, bmask_ref,
                     node_out_ref, edge_out_ref,
                     *, num_layers, build_edge_mask):
    f32 = jnp.float32
    bf16 = jnp.bfloat16
    # bf16 operands on the MXU, f32 accumulation.
    dot = lambda a, b: jnp.dot(a.astype(bf16), b.astype(bf16),
                               preferred_element_type=f32)

    x = node_ref[...]          # (bn, D)        node features (flattened batch)
    e = edge_ref[...]          # (bn*N, E)      edge features (flattened pairs)
    avg = avg_ref[...]         # (bn, bn*N)     mean-over-neighbors j   [bf16]
    p2 = p2_ref[...]           # (bn*N, 2*bn)   [P_self | P_neigh]      [bf16]

    wx = wx_ref[...]           # (D, 4H) = [wm1s | wm1n | wn1x | ws1]
    we = we_ref[...]           # (E, 2H) = [wm1e | we1e]
    wsh = wsh_ref[...]         # (S, 2H) = [we1s | we1n]
    ws2 = ws2_ref[...]
    wm2 = wm2_ref[...]
    wmf = wmf_ref[...]         # (H, H)  = wm3 @ wn1m  (folded in wrapper)
    wn2, wn3 = wn2_ref[...], wn3_ref[...]
    we2, we3 = we2_ref[...], we3_ref[...]
    H = wm2.shape[0]

    def layer(x, e):
        # ---- shared wide first-layer matmuls, sliced on lane boundaries ----
        xh = dot(x, wx)                    # (bn, 4H)
        eh = dot(e, we)                    # (bn*N, 2H)
        a_self = xh[:, 0 * H:1 * H]        # message-gen "self" term
        a_neigh = xh[:, 1 * H:2 * H]       # message-gen "neighbor" term
        n1x_pre = xh[:, 2 * H:3 * H]       # node-update node term (pre-ReLU)
        hs_pre = xh[:, 3 * H:4 * H]        # node-shrink hidden (pre-ReLU)
        c_msg = eh[:, 0:H]
        c_edge = eh[:, H:2 * H]

        # ---- node shrink MLP (feeds the edge-update gather) ----
        shrink = dot(jnp.maximum(hs_pre, 0.0), ws2)        # (bn, S)
        sh = dot(shrink, wsh)                              # (bn, 2H)

        # ---- ONE fused gather matmul for both message & edge paths ----
        # rows: [self ; neighbor], lanes: [message terms | edge terms]
        a_all = jnp.concatenate(
            [jnp.concatenate([a_self, a_neigh], axis=0),          # (2bn, H)
             jnp.concatenate([sh[:, 0:H], sh[:, H:2 * H]], axis=0)],
            axis=1)                                               # (2bn, 2H)
        g = dot(p2, a_all)                                        # (bn*N, 2H)

        # ---- message generation MLP over all (i, j) pairs ----
        h = jnp.maximum(g[:, 0:H] + c_msg, 0.0)
        h = jnp.maximum(dot(h, wm2), 0.0)
        # mean over neighbors then (wm3 @ wn1m) fold: avg@(h@wm3)@wn1m
        msum = dot(avg, h)                                        # (bn, H)

        # ---- node update MLP on cat(message, node) ----
        hn = jnp.maximum(dot(msum, wmf) + n1x_pre, 0.0)
        hn = jnp.maximum(dot(hn, wn2), 0.0)
        new_node = dot(hn, wn3)                                   # (bn, D)

        # ---- edge update MLP over all (i, j) pairs ----
        he = jnp.maximum(g[:, H:2 * H] + c_edge, 0.0)
        he = jnp.maximum(dot(he, we2), 0.0)
        new_edge = dot(he, we3)                                   # (bn*N, E)

        # ---- residuals + edge gating (f32) ----
        x = x + new_node
        e = jnp.where(e > 0, e + new_edge, e)
        return x, e

    if num_layers <= 2:                    # unroll short chains (config: 2)
        for _ in range(num_layers):
            x, e = layer(x, e)
    else:                                  # shared weights: loop-invariant body
        x, e = jax.lax.fori_loop(0, num_layers, lambda i, c: layer(*c), (x, e))

    node_out_ref[...] = x
    if build_edge_mask:
        edge_out_ref[...] = dot(e, wmask_ref[...]) + bmask_ref[...]
    else:
        edge_out_ref[...] = e


# --------------------------------------------------------------------------
# Wrapper (pallas_call plumbing; all layout/cast work done here in XLA)
# --------------------------------------------------------------------------
def _full_spec(a):
    nd = a.ndim
    return pl.BlockSpec(a.shape, lambda g, _nd=nd: (0,) * _nd)


def gnn_forward(node, edge, params, num_layers, build_edge_mask=True,
                batch_block=None):
    B, N, D = node.shape
    E = edge.shape[-1]
    heads = params["wmask"].shape[1]
    BB = B if batch_block is None else batch_block   # batch elems per grid step
    assert B % BB == 0
    G = B // BB
    bf16 = jnp.bfloat16

    # cat(x, y, z) @ W == x @ Wx + y @ Wy + z @ Wz  -> concat along OUTPUT dim
    wx = jnp.concatenate(
        [params["wm1s"], params["wm1n"], params["wn1x"], params["ws1"]],
        axis=1).astype(bf16)
    we = jnp.concatenate([params["wm1e"], params["we1e"]], axis=1).astype(bf16)
    wsh = jnp.concatenate([params["we1s"], params["we1n"]], axis=1).astype(bf16)
    # Fold wm3 @ wn1m: mean-over-neighbors is linear, so
    # (avg @ (h @ wm3)) @ wn1m == (avg @ h) @ (wm3 @ wn1m).
    wmf = (params["wm3"] @ params["wn1m"]).astype(bf16)

    # Constant gather / averaging matrices (0/1 and 1/N entries; exact in bf16
    # for power-of-two N): push repeat_self / repeat_neighbors and the
    # mean-over-neighbors through the MXU, with self/neighbor merged into P2.
    bn = BB * N
    eye_bn = np.eye(bn, dtype=np.float32)
    avg = jnp.asarray(np.repeat(eye_bn, N, axis=1) / N).astype(bf16)  # (bn, bn*N)
    p_self = np.repeat(eye_bn, N, axis=0)                             # (bn*N, bn)
    p_neigh = np.kron(np.eye(BB, dtype=np.float32),
                      np.tile(np.eye(N, dtype=np.float32), (N, 1)))   # (bn*N, bn)
    p2 = jnp.asarray(np.concatenate([p_self, p_neigh], axis=1)).astype(bf16)

    # Pre-flattened, lane-dense layouts (pure XLA reshapes, free in HBM).
    node_flat = node.reshape(B * N, D)
    edge_flat = edge.reshape(B * N * N, E)

    weights = [wx, params["ws2"].astype(bf16), we, params["wm2"].astype(bf16),
               wmf, params["wn2"].astype(bf16), params["wn3"].astype(bf16),
               wsh, params["we2"].astype(bf16), params["we3"].astype(bf16),
               params["wmask"].astype(bf16), params["bmask"]]   # bias stays f32

    out_e_dim = heads if build_edge_mask else E
    kernel = functools.partial(fused_gnn_kernel, num_layers=num_layers,
                               build_edge_mask=build_edge_mask)

    in_specs = ([pl.BlockSpec((BB * N, D), lambda g: (g, 0)),
                 pl.BlockSpec((BB * N * N, E), lambda g: (g, 0)),
                 _full_spec(avg), _full_spec(p2)]
                + [_full_spec(w) for w in weights])
    out_specs = (pl.BlockSpec((BB * N, D), lambda g: (g, 0)),
                 pl.BlockSpec((BB * N * N, out_e_dim), lambda g: (g, 0)))
    out_shape = (jax.ShapeDtypeStruct((B * N, D), jnp.float32),
                 jax.ShapeDtypeStruct((B * N * N, out_e_dim), jnp.float32))

    node_out, edge_out = pl.pallas_call(
        kernel,
        grid=(G,),
        in_specs=in_specs,
        out_specs=out_specs,
        out_shape=out_shape,
        compiler_params=pltpu.CompilerParams(
            dimension_semantics=("parallel",)),
    )(node_flat, edge_flat, avg, p2, *weights)

    return (node_out.reshape(B, N, D),
            edge_out.reshape(B, N, N, out_e_dim))


# --------------------------------------------------------------------------
# Deterministic parameter construction (nn.Linear, bias=False except mask layer)
# --------------------------------------------------------------------------
def make_params(key, D, E, M, S, H, heads):
    keys = iter(jax.random.split(key, 32))

    def lin(fan_in, fan_out, scale_fan_in=None):
        s = 1.0 / np.sqrt(scale_fan_in if scale_fan_in is not None else fan_in)
        return jax.random.normal(next(keys), (fan_in, fan_out), jnp.float32) * s

    p = {}
    # node_shrink_layer: MLP(D -> S, n_hidden_layers=1): D->H, H->S
    p["ws1"] = lin(D, H)
    p["ws2"] = lin(H, S)
    # message_gen_network: MLP(2D+E -> M): first layer split into self/neigh/edge
    p["wm1s"] = lin(D, H, scale_fan_in=2 * D + E)
    p["wm1n"] = lin(D, H, scale_fan_in=2 * D + E)
    p["wm1e"] = lin(E, H, scale_fan_in=2 * D + E)
    p["wm2"] = lin(H, H)
    p["wm3"] = lin(H, M)
    # node_update_network: MLP(M+D -> D): first layer split into message/node
    p["wn1m"] = lin(M, H, scale_fan_in=M + D)
    p["wn1x"] = lin(D, H, scale_fan_in=M + D)
    p["wn2"] = lin(H, H)
    p["wn3"] = lin(H, D)
    # edge_update_network: MLP(2S+E -> E): first layer split into self/neigh/edge
    p["we1s"] = lin(S, H, scale_fan_in=2 * S + E)
    p["we1n"] = lin(S, H, scale_fan_in=2 * S + E)
    p["we1e"] = lin(E, H, scale_fan_in=2 * S + E)
    p["we2"] = lin(H, H)
    p["we3"] = lin(H, E)
    # edge_mask_layer: Linear(E -> heads) with bias
    p["wmask"] = lin(E, heads)
    p["bmask"] = jax.random.normal(next(keys), (1, heads), jnp.float32) * 0.1
    return p


# --------------------------------------------------------------------------
# Pure-JAX f32 reference (mirrors the PyTorch module) for the correctness check
# --------------------------------------------------------------------------
def _mlp3(x, w1, w2, w3):
    h = jnp.maximum(x @ w1, 0.0)
    h = jnp.maximum(h @ w2, 0.0)
    return h @ w3


def gnn_forward_ref(node, edge, p, num_layers, build_edge_mask=True):
    for _ in range(num_layers):
        B, N, D = node.shape
        xs = jnp.broadcast_to(node[:, :, None, :], (B, N, N, D))
        xn = jnp.broadcast_to(node[:, None, :, :], (B, N, N, D))
        wm1 = jnp.concatenate([p["wm1s"], p["wm1n"], p["wm1e"]], axis=0)
        msgs = _mlp3(jnp.concatenate([xs, xn, edge], axis=-1), wm1, p["wm2"], p["wm3"])
        message = jnp.mean(msgs, axis=2)
        wn1 = jnp.concatenate([p["wn1m"], p["wn1x"]], axis=0)
        new_node = _mlp3(jnp.concatenate([message, node], axis=-1), wn1, p["wn2"], p["wn3"])
        shrink = jnp.maximum(node @ p["ws1"], 0.0) @ p["ws2"]
        S = shrink.shape[-1]
        ss = jnp.broadcast_to(shrink[:, :, None, :], (B, N, N, S))
        sn = jnp.broadcast_to(shrink[:, None, :, :], (B, N, N, S))
        we1 = jnp.concatenate([p["we1s"], p["we1n"], p["we1e"]], axis=0)
        new_edge = _mlp3(jnp.concatenate([ss, sn, edge], axis=-1), we1, p["we2"], p["we3"])
        mask = (edge > 0).astype(jnp.float32)
        node = node + new_node
        edge = edge + new_edge * mask
    if build_edge_mask:
        edge = edge @ p["wmask"] + p["bmask"][0]
    return node, edge


# --------------------------------------------------------------------------
if __name__ == "__main__":
    # config: hidden_size=32, edge_size=8, message_length=16,
    #         shrink_node_feature_dim=8, num_GNN_layers=2,
    #         num_attention_heads=4, gnn_edge_mask_layers != '' (mask on)
    B, N = 2, 8
    D, E, M, S, H, HEADS = 32, 8, 16, 8, 128, 4
    NUM_LAYERS = 2

    key = jax.random.PRNGKey(0)
    k_node, k_edge, k_param = jax.random.split(key, 3)
    node = jax.random.normal(k_node, (B, N, D), jnp.float32)
    edge = jax.random.normal(k_edge, (B, N, N, E), jnp.float32)
    params = make_params(k_param, D, E, M, S, H, HEADS)

    out_node, out_edge = gnn_forward(node, edge, params, NUM_LAYERS,
                                     build_edge_mask=True)
    out_node = jax.block_until_ready(out_node)
    out_edge = jax.block_until_ready(out_edge)

    ref_node, ref_edge = gnn_forward_ref(node, edge, params, NUM_LAYERS,
                                         build_edge_mask=True)
    # Tolerance reflects bf16 MXU operands (f32 accumulation) across two
    # shared-weight layers vs. the pure-f32 reference.
    np.testing.assert_allclose(np.asarray(out_node), np.asarray(ref_node),
                               rtol=5e-2, atol=5e-2)
    np.testing.assert_allclose(np.asarray(out_edge), np.asarray(ref_edge),
                               rtol=5e-2, atol=5e-2)

    print("KERNEL_OK")
</pallas_src>

<mosaic_0001>
module attributes {stable_mosaic.version = 11 : i64} {
  func.func @fused_gnn_kernel(%arg0: i32, %arg1: memref<16x32xf32, #tpu.memory_space<vmem>>, %arg2: memref<128x8xf32, #tpu.memory_space<vmem>>, %arg3: memref<16x128xbf16, #tpu.memory_space<vmem>>, %arg4: memref<128x32xbf16, #tpu.memory_space<vmem>>, %arg5: memref<32x512xbf16, #tpu.memory_space<vmem>>, %arg6: memref<128x8xbf16, #tpu.memory_space<vmem>>, %arg7: memref<8x256xbf16, #tpu.memory_space<vmem>>, %arg8: memref<128x128xbf16, #tpu.memory_space<vmem>>, %arg9: memref<128x128xbf16, #tpu.memory_space<vmem>>, %arg10: memref<128x128xbf16, #tpu.memory_space<vmem>>, %arg11: memref<128x32xbf16, #tpu.memory_space<vmem>>, %arg12: memref<8x256xbf16, #tpu.memory_space<vmem>>, %arg13: memref<128x128xbf16, #tpu.memory_space<vmem>>, %arg14: memref<128x8xbf16, #tpu.memory_space<vmem>>, %arg15: memref<8x4xbf16, #tpu.memory_space<vmem>>, %arg16: memref<1x4xf32, #tpu.memory_space<vmem>>, %arg17: memref<16x32xf32, #tpu.memory_space<vmem>>, %arg18: memref<128x4xf32, #tpu.memory_space<vmem>>) attributes {dimension_semantics = [#tpu.dimension_semantics<parallel>], iteration_bounds = array<i64: 1>, scalar_prefetch = 0 : i64, scratch_operands = 0 : i64, tpu.core_type = #tpu.core_type<tc>, window_params = [{transform_indices = @transform_0, window_bounds = array<i64: 16, 32>}, {transform_indices = @transform_1, window_bounds = array<i64: 128, 8>}, {pipeline_mode = #tpu.pipeline_mode<synchronous>, transform_indices = @transform_2, window_bounds = array<i64: 16, 128>}, {pipeline_mode = #tpu.pipeline_mode<synchronous>, transform_indices = @transform_3, window_bounds = array<i64: 128, 32>}, {pipeline_mode = #tpu.pipeline_mode<synchronous>, transform_indices = @transform_4, window_bounds = array<i64: 32, 512>}, {pipeline_mode = #tpu.pipeline_mode<synchronous>, transform_indices = @transform_5, window_bounds = array<i64: 128, 8>}, {pipeline_mode = #tpu.pipeline_mode<synchronous>, transform_indices = @transform_6, window_bounds = array<i64: 8, 256>}, {pipeline_mode = #tpu.pipeline_mode<synchronous>, transform_indices = @transform_7, window_bounds = array<i64: 128, 128>}, {pipeline_mode = #tpu.pipeline_mode<synchronous>, transform_indices = @transform_8, window_bounds = array<i64: 128, 128>}, {pipeline_mode = #tpu.pipeline_mode<synchronous>, transform_indices = @transform_9, window_bounds = array<i64: 128, 128>}, {pipeline_mode = #tpu.pipeline_mode<synchronous>, transform_indices = @transform_10, window_bounds = array<i64: 128, 32>}, {pipeline_mode = #tpu.pipeline_mode<synchronous>, transform_indices = @transform_11, window_bounds = array<i64: 8, 256>}, {pipeline_mode = #tpu.pipeline_mode<synchronous>, transform_indices = @transform_12, window_bounds = array<i64: 128, 128>}, {pipeline_mode = #tpu.pipeline_mode<synchronous>, transform_indices = @transform_13, window_bounds = array<i64: 128, 8>}, {pipeline_mode = #tpu.pipeline_mode<synchronous>, transform_indices = @transform_14, window_bounds = array<i64: 8, 4>}, {pipeline_mode = #tpu.pipeline_mode<synchronous>, transform_indices = @transform_15, window_bounds = array<i64: 1, 4>}, {transform_indices = @transform_16, window_bounds = array<i64: 16, 32>}, {transform_indices = @transform_17, window_bounds = array<i64: 128, 4>}]} {
    %c0 = arith.constant 0 : index
    %c0_0 = arith.constant 0 : index
    %0 = vector.load %arg1[%c0, %c0_0] : memref<16x32xf32, #tpu.memory_space<vmem>>, vector<16x32xf32>
    %c0_1 = arith.constant 0 : index
    %c0_2 = arith.constant 0 : index
    %1 = vector.load %arg2[%c0_1, %c0_2] : memref<128x8xf32, #tpu.memory_space<vmem>>, vector<128x8xf32>
    %c0_3 = arith.constant 0 : index
    %c0_4 = arith.constant 0 : index
    %2 = vector.load %arg3[%c0_3, %c0_4] : memref<16x128xbf16, #tpu.memory_space<vmem>>, vector<16x128xbf16>
    %c0_5 = arith.constant 0 : index
    %c0_6 = arith.constant 0 : index
    %3 = vector.load %arg4[%c0_5, %c0_6] : memref<128x32xbf16, #tpu.memory_space<vmem>>, vector<128x32xbf16>
    %c0_7 = arith.constant 0 : index
    %c0_8 = arith.constant 0 : index
    %4 = vector.load %arg5[%c0_7, %c0_8] : memref<32x512xbf16, #tpu.memory_space<vmem>>, vector<32x512xbf16>
    %c0_9 = arith.constant 0 : index
    %c0_10 = arith.constant 0 : index
    %5 = vector.load %arg7[%c0_9, %c0_10] : memref<8x256xbf16, #tpu.memory_space<vmem>>, vector<8x256xbf16>
    %c0_11 = arith.constant 0 : index
    %c0_12 = arith.constant 0 : index
    %6 = vector.load %arg12[%c0_11, %c0_12] : memref<8x256xbf16, #tpu.memory_space<vmem>>, vector<8x256xbf16>
    %c0_13 = arith.constant 0 : index
    %c0_14 = arith.constant 0 : index
    %7 = vector.load %arg6[%c0_13, %c0_14] : memref<128x8xbf16, #tpu.memory_space<vmem>>, vector<128x8xbf16>
    %c0_15 = arith.constant 0 : index
    %c0_16 = arith.constant 0 : index
    %8 = vector.load %arg8[%c0_15, %c0_16] : memref<128x128xbf16, #tpu.memory_space<vmem>>, vector<128x128xbf16>
    %c0_17 = arith.constant 0 : index
    %c0_18 = arith.constant 0 : index
    %9 = vector.load %arg9[%c0_17, %c0_18] : memref<128x128xbf16, #tpu.memory_space<vmem>>, vector<128x128xbf16>
    %c0_19 = arith.constant 0 : index
    %c0_20 = arith.constant 0 : index
    %10 = vector.load %arg10[%c0_19, %c0_20] : memref<128x128xbf16, #tpu.memory_space<vmem>>, vector<128x128xbf16>
    %c0_21 = arith.constant 0 : index
    %c0_22 = arith.constant 0 : index
    %11 = vector.load %arg11[%c0_21, %c0_22] : memref<128x32xbf16, #tpu.memory_space<vmem>>, vector<128x32xbf16>
    %c0_23 = arith.constant 0 : index
    %c0_24 = arith.constant 0 : index
    %12 = vector.load %arg13[%c0_23, %c0_24] : memref<128x128xbf16, #tpu.memory_space<vmem>>, vector<128x128xbf16>
    %c0_25 = arith.constant 0 : index
    %c0_26 = arith.constant 0 : index
    %13 = vector.load %arg14[%c0_25, %c0_26] : memref<128x8xbf16, #tpu.memory_space<vmem>>, vector<128x8xbf16>
    %14 = arith.truncf %0 : vector<16x32xf32> to vector<16x32xbf16>
    %cst = arith.constant dense<0.000000e+00> : vector<16x512xf32>
    %15 = tpu.matmul %14, %4, %cst {dimension_numbers = #tpu.dot_dimension_numbers<[1], [0], [0], [1], [0, 0, 1, 1], [], []>} : vector<16x32xbf16>, vector<32x512xbf16>, vector<16x512xf32> -> vector<16x512xf32>
    %16 = arith.truncf %1 : vector<128x8xf32> to vector<128x8xbf16>
    %cst_27 = arith.constant dense<0.000000e+00> : vector<128x256xf32>
    %17 = tpu.matmul %16, %5, %cst_27 {dimension_numbers = #tpu.dot_dimension_numbers<[1], [0], [0], [1], [0, 0, 1, 1], [], []>} : vector<128x8xbf16>, vector<8x256xbf16>, vector<128x256xf32> -> vector<128x256xf32>
    %18 = vector.extract_strided_slice %15 {offsets = [0, 0], sizes = [16, 128], strides = [1, 1]} : vector<16x512xf32> to vector<16x128xf32>
    %19 = vector.extract_strided_slice %15 {offsets = [0, 128], sizes = [16, 128], strides = [1, 1]} : vector<16x512xf32> to vector<16x128xf32>
    %20 = vector.extract_strided_slice %15 {offsets = [0, 256], sizes = [16, 128], strides = [1, 1]} : vector<16x512xf32> to vector<16x128xf32>
    %21 = vector.extract_strided_slice %15 {offsets = [0, 384], sizes = [16, 128], strides = [1, 1]} : vector<16x512xf32> to vector<16x128xf32>
    %22 = vector.extract_strided_slice %17 {offsets = [0, 0], sizes = [128, 128], strides = [1, 1]} : vector<128x256xf32> to vector<128x128xf32>
    %23 = vector.extract_strided_slice %17 {offsets = [0, 128], sizes = [128, 128], strides = [1, 1]} : vector<128x256xf32> to vector<128x128xf32>
    %cst_28 = arith.constant 0.000000e+00 : f32
    %24 = vector.broadcast %cst_28 : f32 to vector<16x128xf32>
    %25 = arith.maximumf %21, %24 : vector<16x128xf32>
    %26 = arith.truncf %25 : vector<16x128xf32> to vector<16x128xbf16>
    %cst_29 = arith.constant dense<0.000000e+00> : vector<16x8xf32>
    %27 = tpu.matmul %26, %7, %cst_29 {dimension_numbers = #tpu.dot_dimension_numbers<[1], [0], [0], [1], [0, 0, 1, 1], [], []>} : vector<16x128xbf16>, vector<128x8xbf16>, vector<16x8xf32> -> vector<16x8xf32>
    %28 = arith.truncf %27 : vector<16x8xf32> to vector<16x8xbf16>
    %cst_30 = arith.constant dense<0.000000e+00> : vector<16x256xf32>
    %29 = tpu.matmul %28, %6, %cst_30 {dimension_numbers = #tpu.dot_dimension_numbers<[1], [0], [0], [1], [0, 0, 1, 1], [], []>} : vector<16x8xbf16>, vector<8x256xbf16>, vector<16x256xf32> -> vector<16x256xf32>
    %30 = tpu.concatenate %18, %19 in 0 : vector<16x128xf32>, vector<16x128xf32> -> vector<32x128xf32>
    %31 = vector.extract_strided_slice %29 {offsets = [0, 0], sizes = [16, 128], strides = [1, 1]} : vector<16x256xf32> to vector<16x128xf32>
    %32 = vector.extract_strided_slice %29 {offsets = [0, 128], sizes = [16, 128], strides = [1, 1]} : vector<16x256xf32> to vector<16x128xf32>
    %33 = tpu.concatenate %31, %32 in 0 : vector<16x128xf32>, vector<16x128xf32> -> vector<32x128xf32>
    %34 = tpu.concatenate %30, %33 in 1 : vector<32x128xf32>, vector<32x128xf32> -> vector<32x256xf32>
    %35 = arith.truncf %34 : vector<32x256xf32> to vector<32x256xbf16>
    %cst_31 = arith.constant dense<0.000000e+00> : vector<128x256xf32>
    %36 = tpu.matmul %3, %35, %cst_31 {dimension_numbers = #tpu.dot_dimension_numbers<[1], [0], [0], [1], [0, 0, 1, 1], [], []>} : vector<128x32xbf16>, vector<32x256xbf16>, vector<128x256xf32> -> vector<128x256xf32>
    %37 = vector.extract_strided_slice %36 {offsets = [0, 0], sizes = [128, 128], strides = [1, 1]} : vector<128x256xf32> to vector<128x128xf32>
    %38 = arith.addf %37, %22 : vector<128x128xf32>
    %cst_32 = arith.constant 0.000000e+00 : f32
    %39 = vector.broadcast %cst_32 : f32 to vector<128x128xf32>
    %40 = arith.maximumf %38, %39 : vector<128x128xf32>
    %41 = arith.truncf %40 : vector<128x128xf32> to vector<128x128xbf16>
    %cst_33 = arith.constant dense<0.000000e+00> : vector<128x128xf32>
    %42 = tpu.matmul %41, %8, %cst_33 {dimension_numbers = #tpu.dot_dimension_numbers<[1], [0], [0], [1], [0, 0, 1, 1], [], []>} : vector<128x128xbf16>, vector<128x128xbf16>, vector<128x128xf32> -> vector<128x128xf32>
    %cst_34 = arith.constant 0.000000e+00 : f32
    %43 = vector.broadcast %cst_34 : f32 to vector<128x128xf32>
    %44 = arith.maximumf %42, %43 : vector<128x128xf32>
    %45 = arith.truncf %44 : vector<128x128xf32> to vector<128x128xbf16>
    %cst_35 = arith.constant dense<0.000000e+00> : vector<16x128xf32>
    %46 = tpu.matmul %2, %45, %cst_35 {dimension_numbers = #tpu.dot_dimension_numbers<[1], [0], [0], [1], [0, 0, 1, 1], [], []>} : vector<16x128xbf16>, vector<128x128xbf16>, vector<16x128xf32> -> vector<16x128xf32>
    %47 = arith.truncf %46 : vector<16x128xf32> to vector<16x128xbf16>
    %cst_36 = arith.constant dense<0.000000e+00> : vector<16x128xf32>
    %48 = tpu.matmul %47, %9, %cst_36 {dimension_numbers = #tpu.dot_dimension_numbers<[1], [0], [0], [1], [0, 0, 1, 1], [], []>} : vector<16x128xbf16>, vector<128x128xbf16>, vector<16x128xf32> -> vector<16x128xf32>
    %49 = arith.addf %48, %20 : vector<16x128xf32>
    %cst_37 = arith.constant 0.000000e+00 : f32
    %50 = vector.broadcast %cst_37 : f32 to vector<16x128xf32>
    %51 = arith.maximumf %49, %50 : vector<16x128xf32>
    %52 = arith.truncf %51 : vector<16x128xf32> to vector<16x128xbf16>
    %cst_38 = arith.constant dense<0.000000e+00> : vector<16x128xf32>
    %53 = tpu.matmul %52, %10, %cst_38 {dimension_numbers = #tpu.dot_dimension_numbers<[1], [0], [0], [1], [0, 0, 1, 1], [], []>} : vector<16x128xbf16>, vector<128x128xbf16>, vector<16x128xf32> -> vector<16x128xf32>
    %cst_39 = arith.constant 0.000000e+00 : f32
    %54 = vector.broadcast %cst_39 : f32 to vector<16x128xf32>
    %55 = arith.maximumf %53, %54 : vector<16x128xf32>
    %56 = arith.truncf %55 : vector<16x128xf32> to vector<16x128xbf16>
    %cst_40 = arith.constant dense<0.000000e+00> : vector<16x32xf32>
    %57 = tpu.matmul %56, %11, %cst_40 {dimension_numbers = #tpu.dot_dimension_numbers<[1], [0], [0], [1], [0, 0, 1, 1], [], []>} : vector<16x128xbf16>, vector<128x32xbf16>, vector<16x32xf32> -> vector<16x32xf32>
    %58 = vector.extract_strided_slice %36 {offsets = [0, 128], sizes = [128, 128], strides = [1, 1]} : vector<128x256xf32> to vector<128x128xf32>
    %59 = arith.addf %58, %23 : vector<128x128xf32>
    %cst_41 = arith.constant 0.000000e+00 : f32
    %60 = vector.broadcast %cst_41 : f32 to vector<128x128xf32>
    %61 = arith.maximumf %59, %60 : vector<128x128xf32>
    %62 = arith.truncf %61 : vector<128x128xf32> to vector<128x128xbf16>
    %cst_42 = arith.constant dense<0.000000e+00> : vector<128x128xf32>
    %63 = tpu.matmul %62, %12, %cst_42 {dimension_numbers = #tpu.dot_dimension_numbers<[1], [0], [0], [1], [0, 0, 1, 1], [], []>} : vector<128x128xbf16>, vector<128x128xbf16>, vector<128x128xf32> -> vector<128x128xf32>
    %cst_43 = arith.constant 0.000000e+00 : f32
    %64 = vector.broadcast %cst_43 : f32 to vector<128x128xf32>
    %65 = arith.maximumf %63, %64 : vector<128x128xf32>
    %66 = arith.truncf %65 : vector<128x128xf32> to vector<128x128xbf16>
    %cst_44 = arith.constant dense<0.000000e+00> : vector<128x8xf32>
    %67 = tpu.matmul %66, %13, %cst_44 {dimension_numbers = #tpu.dot_dimension_numbers<[1], [0], [0], [1], [0, 0, 1, 1], [], []>} : vector<128x128xbf16>, vector<128x8xbf16>, vector<128x8xf32> -> vector<128x8xf32>
    %68 = arith.addf %0, %57 : vector<16x32xf32>
    %cst_45 = arith.constant 0.000000e+00 : f32
    %69 = vector.broadcast %cst_45 : f32 to vector<128x8xf32>
    %70 = arith.cmpf ogt, %1, %69 : vector<128x8xf32>
    %71 = arith.addf %1, %67 : vector<128x8xf32>
    %72 = arith.select %70, %71, %1 : vector<128x8xi1>, vector<128x8xf32>
    %73 = arith.truncf %68 : vector<16x32xf32> to vector<16x32xbf16>
    %cst_46 = arith.constant dense<0.000000e+00> : vector<16x512xf32>
    %74 = tpu.matmul %73, %4, %cst_46 {dimension_numbers = #tpu.dot_dimension_numbers<[1], [0], [0], [1], [0, 0, 1, 1], [], []>} : vector<16x32xbf16>, vector<32x512xbf16>, vector<16x512xf32> -> vector<16x512xf32>
    %75 = arith.truncf %72 : vector<128x8xf32> to vector<128x8xbf16>
    %cst_47 = arith.constant dense<0.000000e+00> : vector<128x256xf32>
    %76 = tpu.matmul %75, %5, %cst_47 {dimension_numbers = #tpu.dot_dimension_numbers<[1], [0], [0], [1], [0, 0, 1, 1], [], []>} : vector<128x8xbf16>, vector<8x256xbf16>, vector<128x256xf32> -> vector<128x256xf32>
    %77 = vector.extract_strided_slice %74 {offsets = [0, 0], sizes = [16, 128], strides = [1, 1]} : vector<16x512xf32> to vector<16x128xf32>
    %78 = vector.extract_strided_slice %74 {offsets = [0, 128], sizes = [16, 128], strides = [1, 1]} : vector<16x512xf32> to vector<16x128xf32>
    %79 = vector.extract_strided_slice %74 {offsets = [0, 256], sizes = [16, 128], strides = [1, 1]} : vector<16x512xf32> to vector<16x128xf32>
    %80 = vector.extract_strided_slice %74 {offsets = [0, 384], sizes = [16, 128], strides = [1, 1]} : vector<16x512xf32> to vector<16x128xf32>
    %81 = vector.extract_strided_slice %76 {offsets = [0, 0], sizes = [128, 128], strides = [1, 1]} : vector<128x256xf32> to vector<128x128xf32>
    %82 = vector.extract_strided_slice %76 {offsets = [0, 128], sizes = [128, 128], strides = [1, 1]} : vector<128x256xf32> to vector<128x128xf32>
    %cst_48 = arith.constant 0.000000e+00 : f32
    %83 = vector.broadcast %cst_48 : f32 to vector<16x128xf32>
    %84 = arith.maximumf %80, %83 : vector<16x128xf32>
    %85 = arith.truncf %84 : vector<16x128xf32> to vector<16x128xbf16>
    %cst_49 = arith.constant dense<0.000000e+00> : vector<16x8xf32>
    %86 = tpu.matmul %85, %7, %cst_49 {dimension_numbers = #tpu.dot_dimension_numbers<[1], [0], [0], [1], [0, 0, 1, 1], [], []>} : vector<16x128xbf16>, vector<128x8xbf16>, vector<16x8xf32> -> vector<16x8xf32>
    %87 = arith.truncf %86 : vector<16x8xf32> to vector<16x8xbf16>
    %cst_50 = arith.constant dense<0.000000e+00> : vector<16x256xf32>
    %88 = tpu.matmul %87, %6, %cst_50 {dimension_numbers = #tpu.dot_dimension_numbers<[1], [0], [0], [1], [0, 0, 1, 1], [], []>} : vector<16x8xbf16>, vector<8x256xbf16>, vector<16x256xf32> -> vector<16x256xf32>
    %89 = tpu.concatenate %77, %78 in 0 : vector<16x128xf32>, vector<16x128xf32> -> vector<32x128xf32>
    %90 = vector.extract_strided_slice %88 {offsets = [0, 0], sizes = [16, 128], strides = [1, 1]} : vector<16x256xf32> to vector<16x128xf32>
    %91 = vector.extract_strided_slice %88 {offsets = [0, 128], sizes = [16, 128], strides = [1, 1]} : vector<16x256xf32> to vector<16x128xf32>
    %92 = tpu.concatenate %90, %91 in 0 : vector<16x128xf32>, vector<16x128xf32> -> vector<32x128xf32>
    %93 = tpu.concatenate %89, %92 in 1 : vector<32x128xf32>, vector<32x128xf32> -> vector<32x256xf32>
    %94 = arith.truncf %93 : vector<32x256xf32> to vector<32x256xbf16>
    %cst_51 = arith.constant dense<0.000000e+00> : vector<128x256xf32>
    %95 = tpu.matmul %3, %94, %cst_51 {dimension_numbers = #tpu.dot_dimension_numbers<[1], [0], [0], [1], [0, 0, 1, 1], [], []>} : vector<128x32xbf16>, vector<32x256xbf16>, vector<128x256xf32> -> vector<128x256xf32>
    %96 = vector.extract_strided_slice %95 {offsets = [0, 0], sizes = [128, 128], strides = [1, 1]} : vector<128x256xf32> to vector<128x128xf32>
    %97 = arith.addf %96, %81 : vector<128x128xf32>
    %cst_52 = arith.constant 0.000000e+00 : f32
    %98 = vector.broadcast %cst_52 : f32 to vector<128x128xf32>
    %99 = arith.maximumf %97, %98 : vector<128x128xf32>
    %100 = arith.truncf %99 : vector<128x128xf32> to vector<128x128xbf16>
    %cst_53 = arith.constant dense<0.000000e+00> : vector<128x128xf32>
    %101 = tpu.matmul %100, %8, %cst_53 {dimension_numbers = #tpu.dot_dimension_numbers<[1], [0], [0], [1], [0, 0, 1, 1], [], []>} : vector<128x128xbf16>, vector<128x128xbf16>, vector<128x128xf32> -> vector<128x128xf32>
    %cst_54 = arith.constant 0.000000e+00 : f32
    %102 = vector.broadcast %cst_54 : f32 to vector<128x128xf32>
    %103 = arith.maximumf %101, %102 : vector<128x128xf32>
    %104 = arith.truncf %103 : vector<128x128xf32> to vector<128x128xbf16>
    %cst_55 = arith.constant dense<0.000000e+00> : vector<16x128xf32>
    %105 = tpu.matmul %2, %104, %cst_55 {dimension_numbers = #tpu.dot_dimension_numbers<[1], [0], [0], [1], [0, 0, 1, 1], [], []>} : vector<16x128xbf16>, vector<128x128xbf16>, vector<16x128xf32> -> vector<16x128xf32>
    %106 = arith.truncf %105 : vector<16x128xf32> to vector<16x128xbf16>
    %cst_56 = arith.constant dense<0.000000e+00> : vector<16x128xf32>
    %107 = tpu.matmul %106, %9, %cst_56 {dimension_numbers = #tpu.dot_dimension_numbers<[1], [0], [0], [1], [0, 0, 1, 1], [], []>} : vector<16x128xbf16>, vector<128x128xbf16>, vector<16x128xf32> -> vector<16x128xf32>
    %108 = arith.addf %107, %79 : vector<16x128xf32>
    %cst_57 = arith.constant 0.000000e+00 : f32
    %109 = vector.broadcast %cst_57 : f32 to vector<16x128xf32>
    %110 = arith.maximumf %108, %109 : vector<16x128xf32>
    %111 = arith.truncf %110 : vector<16x128xf32> to vector<16x128xbf16>
    %cst_58 = arith.constant dense<0.000000e+00> : vector<16x128xf32>
    %112 = tpu.matmul %111, %10, %cst_58 {dimension_numbers = #tpu.dot_dimension_numbers<[1], [0], [0], [1], [0, 0, 1, 1], [], []>} : vector<16x128xbf16>, vector<128x128xbf16>, vector<16x128xf32> -> vector<16x128xf32>
    %cst_59 = arith.constant 0.000000e+00 : f32
    %113 = vector.broadcast %cst_59 : f32 to vector<16x128xf32>
    %114 = arith.maximumf %112, %113 : vector<16x128xf32>
    %115 = arith.truncf %114 : vector<16x128xf32> to vector<16x128xbf16>
    %cst_60 = arith.constant dense<0.000000e+00> : vector<16x32xf32>
    %116 = tpu.matmul %115, %11, %cst_60 {dimension_numbers = #tpu.dot_dimension_numbers<[1], [0], [0], [1], [0, 0, 1, 1], [], []>} : vector<16x128xbf16>, vector<128x32xbf16>, vector<16x32xf32> -> vector<16x32xf32>
    %117 = vector.extract_strided_slice %95 {offsets = [0, 128], sizes = [128, 128], strides = [1, 1]} : vector<128x256xf32> to vector<128x128xf32>
    %118 = arith.addf %117, %82 : vector<128x128xf32>
    %cst_61 = arith.constant 0.000000e+00 : f32
    %119 = vector.broadcast %cst_61 : f32 to vector<128x128xf32>
    %120 = arith.maximumf %118, %119 : vector<128x128xf32>
    %121 = arith.truncf %120 : vector<128x128xf32> to vector<128x128xbf16>
    %cst_62 = arith.constant dense<0.000000e+00> : vector<128x128xf32>
    %122 = tpu.matmul %121, %12, %cst_62 {dimension_numbers = #tpu.dot_dimension_numbers<[1], [0], [0], [1], [0, 0, 1, 1], [], []>} : vector<128x128xbf16>, vector<128x128xbf16>, vector<128x128xf32> -> vector<128x128xf32>
    %cst_63 = arith.constant 0.000000e+00 : f32
    %123 = vector.broadcast %cst_63 : f32 to vector<128x128xf32>
    %124 = arith.maximumf %122, %123 : vector<128x128xf32>
    %125 = arith.truncf %124 : vector<128x128xf32> to vector<128x128xbf16>
    %cst_64 = arith.constant dense<0.000000e+00> : vector<128x8xf32>
    %126 = tpu.matmul %125, %13, %cst_64 {dimension_numbers = #tpu.dot_dimension_numbers<[1], [0], [0], [1], [0, 0, 1, 1], [], []>} : vector<128x128xbf16>, vector<128x8xbf16>, vector<128x8xf32> -> vector<128x8xf32>
    %127 = arith.addf %68, %116 : vector<16x32xf32>
    %cst_65 = arith.constant 0.000000e+00 : f32
    %128 = vector.broadcast %cst_65 : f32 to vector<128x8xf32>
    %129 = arith.cmpf ogt, %72, %128 : vector<128x8xf32>
    %130 = arith.addf %72, %126 : vector<128x8xf32>
    %131 = arith.select %129, %130, %72 : vector<128x8xi1>, vector<128x8xf32>
    %c0_66 = arith.constant 0 : index
    %c0_67 = arith.constant 0 : index
    %132 = vector.load %arg17[%c0_66, %c0_67] : memref<16x32xf32, #tpu.memory_space<vmem>>, vector<16x32xf32>
    tpu.vector_store %arg17[%c0_66, %c0_67], %127 {strides = array<i32>} : memref<16x32xf32, #tpu.memory_space<vmem>>, vector<16x32xf32>,
    %c0_68 = arith.constant 0 : index
    %c0_69 = arith.constant 0 : index
    %133 = vector.load %arg15[%c0_68, %c0_69] : memref<8x4xbf16, #tpu.memory_space<vmem>>, vector<8x4xbf16>
    %134 = arith.truncf %131 : vector<128x8xf32> to vector<128x8xbf16>
    %cst_70 = arith.constant dense<0.000000e+00> : vector<128x4xf32>
    %135 = tpu.matmul %134, %133, %cst_70 {dimension_numbers = #tpu.dot_dimension_numbers<[1], [0], [0], [1], [0, 0, 1, 1], [], []>} : vector<128x8xbf16>, vector<8x4xbf16>, vector<128x4xf32> -> vector<128x4xf32>
    %c0_71 = arith.constant 0 : index
    %c0_72 = arith.constant 0 : index
    %136 = vector.load %arg16[%c0_71, %c0_72] : memref<1x4xf32, #tpu.memory_space<vmem>>, vector<1x4xf32>
    %137 = vector.broadcast %136 : vector<1x4xf32> to vector<128x4xf32>
    %138 = arith.addf %135, %137 : vector<128x4xf32>
    %c0_73 = arith.constant 0 : index
    %c0_74 = arith.constant 0 : index
    %139 = vector.load %arg18[%c0_73, %c0_74] : memref<128x4xf32, #tpu.memory_space<vmem>>, vector<128x4xf32>
    tpu.vector_store %arg18[%c0_73, %c0_74], %138 {strides = array<i32>} : memref<128x4xf32, #tpu.memory_space<vmem>>, vector<128x4xf32>,
    return
  }
  func.func @transform_0(%arg0: i32) -> (i32, i32) {
    %c0_i32 = arith.constant 0 : i32
    %c0_i32_0 = arith.constant 0 : i32
    return %arg0, %c0_i32 : i32, i32
  }
  func.func @transform_1(%arg0: i32) -> (i32, i32) {
    %c0_i32 = arith.constant 0 : i32
    %c0_i32_0 = arith.constant 0 : i32
    return %arg0, %c0_i32 : i32, i32
  }
  func.func @transform_2(%arg0: i32) -> (i32, i32) {
    %c0_i32 = arith.constant 0 : i32
    %c0_i32_0 = arith.constant 0 : i32
    %c0_i32_1 = arith.constant 0 : i32
    return %c0_i32, %c0_i32_0 : i32, i32
  }
  func.func @transform_3(%arg0: i32) -> (i32, i32) {
    %c0_i32 = arith.constant 0 : i32
    %c0_i32_0 = arith.constant 0 : i32
    %c0_i32_1 = arith.constant 0 : i32
    return %c0_i32, %c0_i32_0 : i32, i32
  }
  func.func @transform_4(%arg0: i32) -> (i32, i32) {
    %c0_i32 = arith.constant 0 : i32
    %c0_i32_0 = arith.constant 0 : i32
    %c0_i32_1 = arith.constant 0 : i32
    return %c0_i32, %c0_i32_0 : i32, i32
  }
  func.func @transform_5(%arg0: i32) -> (i32, i32) {
    %c0_i32 = arith.constant 0 : i32
    %c0_i32_0 = arith.constant 0 : i32
    %c0_i32_1 = arith.constant 0 : i32
    return %c0_i32, %c0_i32_0 : i32, i32
  }
  func.func @transform_6(%arg0: i32) -> (i32, i32) {
    %c0_i32 = arith.constant 0 : i32
    %c0_i32_0 = arith.constant 0 : i32
    %c0_i32_1 = arith.constant 0 : i32
    return %c0_i32, %c0_i32_0 : i32, i32
  }
  func.func @transform_7(%arg0: i32) -> (i32, i32) {
    %c0_i32 = arith.constant 0 : i32
    %c0_i32_0 = arith.constant 0 : i32
    %c0_i32_1 = arith.constant 0 : i32
    return %c0_i32, %c0_i32_0 : i32, i32
  }
  func.func @transform_8(%arg0: i32) -> (i32, i32) {
    %c0_i32 = arith.constant 0 : i32
    %c0_i32_0 = arith.constant 0 : i32
    %c0_i32_1 = arith.constant 0 : i32
    return %c0_i32, %c0_i32_0 : i32, i32
  }
  func.func @transform_9(%arg0: i32) -> (i32, i32) {
    %c0_i32 = arith.constant 0 : i32
    %c0_i32_0 = arith.constant 0 : i32
    %c0_i32_1 = arith.constant 0 : i32
    return %c0_i32, %c0_i32_0 : i32, i32
  }
  func.func @transform_10(%arg0: i32) -> (i32, i32) {
    %c0_i32 = arith.constant 0 : i32
    %c0_i32_0 = arith.constant 0 : i32
    %c0_i32_1 = arith.constant 0 : i32
    return %c0_i32, %c0_i32_0 : i32, i32
  }
  func.func @transform_11(%arg0: i32) -> (i32, i32) {
    %c0_i32 = arith.constant 0 : i32
    %c0_i32_0 = arith.constant 0 : i32
    %c0_i32_1 = arith.constant 0 : i32
    return %c0_i32, %c0_i32_0 : i32, i32
  }
  func.func @transform_12(%arg0: i32) -> (i32, i32) {
    %c0_i32 = arith.constant 0 : i32
    %c0_i32_0 = arith.constant 0 : i32
    %c0_i32_1 = arith.constant 0 : i32
    return %c0_i32, %c0_i32_0 : i32, i32
  }
  func.func @transform_13(%arg0: i32) -> (i32, i32) {
    %c0_i32 = arith.constant 0 : i32
    %c0_i32_0 = arith.constant 0 : i32
    %c0_i32_1 = arith.constant 0 : i32
    return %c0_i32, %c0_i32_0 : i32, i32
  }
  func.func @transform_14(%arg0: i32) -> (i32, i32) {
    %c0_i32 = arith.constant 0 : i32
    %c0_i32_0 = arith.constant 0 : i32
    %c0_i32_1 = arith.constant 0 : i32
    return %c0_i32, %c0_i32_0 : i32, i32
  }
  func.func @transform_15(%arg0: i32) -> (i32, i32) {
    %c0_i32 = arith.constant 0 : i32
    %c0_i32_0 = arith.constant 0 : i32
    %c0_i32_1 = arith.constant 0 : i32
    return %c0_i32, %c0_i32_0 : i32, i32
  }
  func.func @transform_16(%arg0: i32) -> (i32, i32) {
    %c0_i32 = arith.constant 0 : i32
    %c0_i32_0 = arith.constant 0 : i32
    return %arg0, %c0_i32 : i32, i32
  }
  func.func @transform_17(%arg0: i32) -> (i32, i32) {
    %c0_i32 = arith.constant 0 : i32
    %c0_i32_0 = arith.constant 0 : i32
    return %arg0, %c0_i32 : i32, i32
  }
}

</mosaic_0001>

<bundles_post_ra>
// kernel: tpu_custom_call.1
= control target key start
LH: loop header
LB: loop body
LE: loop exit
PB: predicated region body
PF: predicated region fallthrough
CT: control target
= control target key end

     0   :  { %s5190_s0 = inlined_call_operand.vmem [shape: f32[16,32], index: 0, kind: input, shape index: {}]   ;;  %s5191_s1 = inlined_call_operand.vmem [shape: f32[128,8], index: 1, kind: input, shape index: {}]   ;;  %s5192_s2 = inlined_call_operand.vmem [shape: bf16[16,128], index: 2, kind: input, shape index: {}]   ;;  %s5193_s3 = inlined_call_operand.vmem [shape: bf16[128,32], index: 3, kind: input, shape index: {}]   ;;  %s5194_s4 = inlined_call_operand.vmem [shape: bf16[32,512], index: 4, kind: input, shape index: {}]   ;;  %s5195_s5 = inlined_call_operand.vmem [shape: bf16[128,8], index: 5, kind: input, shape index: {}]   ;;  %s5196_s6 = inlined_call_operand.vmem [shape: bf16[8,256], index: 6, kind: input, shape index: {}]   ;;  %s5197_s7 = inlined_call_operand.vmem [shape: bf16[128,128], index: 7, kind: input, shape index: {}]   ;;  %s5198_s8 = inlined_call_operand.vmem [shape: bf16[128,128], index: 8, kind: input, shape index: {}]   ;;  %s5199_s9 = inlined_call_operand.vmem [shape: bf16[128,128], index: 9, kind: input, shape index: {}]   ;;  %s5200_s10 = inlined_call_operand.vmem [shape: bf16[128,32], index: 10, kind: input, shape index: {}]   ;;  %s5201_s11 = inlined_call_operand.vmem [shape: bf16[8,256], index: 11, kind: input, shape index: {}]   ;;  %s5202_s12 = inlined_call_operand.vmem [shape: bf16[128,128], index: 12, kind: input, shape index: {}]   ;;  %s5203_s13 = inlined_call_operand.vmem [shape: bf16[128,8], index: 13, kind: input, shape index: {}]   ;;  %s5204_s14 = inlined_call_operand.vmem [shape: bf16[8,4], index: 14, kind: input, shape index: {}]   ;;  %s5205_s15 = inlined_call_operand.vmem [shape: f32[1,4], index: 15, kind: input, shape index: {}]   ;;  %s5206_s16 = inlined_call_operand.hbm [shape: f32[16,32], index: 16, kind: output, shape index: {0}]   ;;  %s5207_s17 = inlined_call_operand.vmem [shape: f32[128,4], index: 17, kind: output, shape index: {1}]  }
   0x1   :  { %5210 = sst [smem:[#allocation5_spill]] %s5190_s0 }
   0x2   :  { %5211 = sst [smem:[#allocation6_spill]] %s5191_s1 }
   0x3   :  { %v3835_v0 = vld [vmem:[%s5194_s4 + $0xc] ss:$16 sps:$4 sm:$0xff]   ;;  %v3837_v1 = vld [vmem:[%s5194_s4 + $0x8] ss:$16 sps:$4 sm:$0xff]   ;;  %v4008_v2 = vmov 0   ;;  %s5212_s1 = sld [smem:[#allocation5_spill]] }
   0x4   :  { %335 = vmatprep.mubr.bf16.mxu1 %v4008_v2  ;;  %292 = vmatprep.mubr.bf16.mxu0 %v4008_v2  ;;  %v3838_v3 = vld [vmem:[%s5194_s4 + $0x2c] ss:$16 sps:$4 sm:$0xff]   ;;  %v3840_v4 = vld [vmem:[%s5194_s4 + $0x28] ss:$16 sps:$4 sm:$0xff]   ;;  %vm256_vm0 = vcmask 261120   ;;  %v3841_v8 = vld [vmem:[%s5195_s5] sm:$0xff]  }
   0x5   :  { %303 = vmatprep.subr.bf16.mxu1 %v3835_v0  ;;  %v4009_v9 = vmov 0.0   ;;  %v3842_v10 = vld [vmem:[%s5195_s5 + $0x8] sm:$0xff]   ;;  %v3843_v11 = vld [vmem:[%s5195_s5 + $0x10] sm:$0xff]   ;;  %v3844_v12 = vld [vmem:[%s5195_s5 + $0x18] sm:$0xff]  }
   0x6   :  { %304 = vmatpush1.bf16.msra.mxu1 %v3837_v1  ;;  %v3845_v13 = vld [vmem:[%s5195_s5 + $0x20] sm:$0xff]   ;;  %v3846_v14 = vld [vmem:[%s5195_s5 + $0x28] sm:$0xff]  }
   0x7   :  { %305 = vmatprep.subr.bf16.mxu1 %v3838_v3 }
   0x9   :  { %v57_v5 = vld [vmem:[%s5212_s1] sm:$0xff]  ;;  %v58_v6 = vld [vmem:[%s5212_s1 + $0x8] sm:$0xff] }
   0xa   :  { %v215_v7 = vpack.c.bf16 %v58_v6, %v57_v5  ;;  %306 = vmatpush1.bf16.msra.mxu1 %v3840_v4 }
   0xb   :  { %3354 = vmatprep.subr.bf16.mxu1 %v4009_v9 }
   0xd   :  { %3040 = vmatmul.mubr.msk.bf16.vlgmr.msra.gmra.mrb[0].mxu1 %vm256_vm0, %v215_v7 }
   0xe   :  { %3355 = vmatpush3.bf16.msra.mxu1 %v3841_v8 }
   0xf   :  { %3356 = vmatprep.subr.bf16.mxu1 %v4009_v9 }
  0x12   :  { %3357 = vmatpush3.bf16.msra.mxu1 %v3842_v10 }
  0x13   :  { %3358 = vmatprep.subr.bf16.mxu1 %v4009_v9 }
  0x16   :  { %3359 = vmatpush3.bf16.msra.mxu1 %v3843_v11 }
  0x17   :  { %3360 = vmatprep.subr.bf16.mxu1 %v4009_v9 }
  0x1a   :  { %3361 = vmatpush3.bf16.msra.mxu1 %v3844_v12 }
  0x1b   :  { %3362 = vmatprep.subr.bf16.mxu1 %v4009_v9 }
  0x1e   :  { %3363 = vmatpush3.bf16.msra.mxu1 %v3845_v13 }
  0x1f   :  { %3364 = vmatprep.subr.bf16.mxu1 %v4009_v9 }
  0x22   :  { %3365 = vmatpush3.bf16.msra.mxu1 %v3846_v14 }
  0x23   :  { %3366 = vmatprep.subr.bf16.mxu1 %v4009_v9 }
  0x24   :  { %23 = vsyncpa [#allocation3], 0  ;;  %v3847_v15 = vld [vmem:[%s5195_s5 + $0x30] sm:$0xff]   ;;  %v3848_v16 = vld [vmem:[%s5195_s5 + $0x38] sm:$0xff]   ;;  %vm4010_vm1 = vmmov 0   ;;  %vm384_vm2 = vcmask 1043456  }
  0x25   :  { %3370 = vmatprep.mubr.msk.bf16.mxu1 %vm4010_vm1, %v4009_v9  ;;  %v4162_v17 = vld [vmem:[%s5194_s4 + $0x4] ss:$16 sps:$4 sm:$0xff]   ;;  %v4167_v18 = vld [vmem:[%s5194_s4] ss:$16 sps:$4 sm:$0xff]   ;;  %s5213_s24 = sld [smem:[#allocation6_spill]]  ;;  %vm359_vm3 = vcmask 64512  }
  0x26   :  { %3367 = vmatpush3.bf16.msra.mxu1 %v3847_v15  ;;  %v4172_v19 = vld [vmem:[%s5194_s4 + $0x24] ss:$16 sps:$4 sm:$0xff]   ;;  %260 = vmatprep.subr.bf16.mxu0 %v4162_v17  ;;  %v4179_v20 = vld [vmem:[%s5194_s4 + $0x20] ss:$16 sps:$4 sm:$0xff]   ;;  %v3868_v10 = vld [vmem:[%s5197_s7 + $0x8] sm:$0xff]  }
  0x27   :  { %3368 = vmatprep.subr.bf16.mxu1 %v4009_v9  ;;  %261 = vmatpush1.bf16.msra.mxu0 %v4167_v18  ;;  %v102_v28 = vld [vmem:[%s5201_s11] sm:$0xff]  ;;  %v3869_v11 = vld [vmem:[%s5197_s7 + $0x10] sm:$0xff]   ;;  %v3870_v12 = vld [vmem:[%s5197_s7 + $0x18] sm:$0xff]  }
  0x28   :  { %262 = vmatprep.subr.bf16.mxu0 %v4172_v19  ;;  %v4193_v29 = vcombine.high %v102_v28, %v102_v28  ;;  %v3060_v30 = vcombine.low %v102_v28, %v102_v28  ;;  %v101_v32 = vld [vmem:[%s5196_s6] sm:$0xff]  ;;  %v3861_v28 = vld [vmem:[%s5193_s3 + $0x10] sm:$0xff]  }
  0x29   :  { %v4214_v35 = vcombine.high %v101_v32, %v101_v32  ;;  %v3041_v36 = vcombine.low %v101_v32, %v101_v32  ;;  %v3867_v8 = vld [vmem:[%s5197_s7] sm:$0xff]  }
  0x2a   :  { %3369 = vmatpush3.bf16.msra.mxu1 %v3848_v16  ;;  %v4198_v31 = vsel %vm384_vm2, %v3060_v30, 0  ;;  %v3871_v13 = vld [vmem:[%s5197_s7 + $0x20] sm:$0xff]   ;;  %v3862_v30 = vld [vmem:[%s5193_s3 + $0x18] sm:$0xff]  }
  0x2b   :  { %263 = vmatpush1.bf16.msra.mxu0 %v4179_v20  ;;  %3062 = vmatprep.subr.msk.bf16.mxu1 %vm384_vm2, %v4193_v29  ;;  %v4207_v33 = vld [vmem:[%s5213_s24] sm:$0xff]  ;;  %v4212_v34 = vld [vmem:[%s5213_s24 + $0x8] sm:$0xff]  ;;  %v4219_v37 = vsel %vm384_vm2, %v3041_v36, 0  ;;  %v4235_v42 = vld [vmem:[%s5213_s24 + $0x10] sm:$0xff] }
  0x2c   :  { %3043 = vmatprep.subr.msk.bf16.mxu0 %vm384_vm2, %v4214_v35  ;;  %v346_v38 = vpack.c.bf16 %v4212_v34, %v4207_v33  ;;  %v4240_v43 = vld [vmem:[%s5213_s24 + $0x18] sm:$0xff]  ;;  %v63_v46 = vld [vmem:[%s5213_s24 + $0x20] sm:$0xff]  ;;  %v4254_v47 = vld [vmem:[%s5213_s24 + $0x28] sm:$0xff]  ;;  %vm1721_vm4 = vcmp.gt.f32.partialorder %v4207_v33, 0.0  ;;  %vm1722_vm5 = vcmp.gt.f32.partialorder %v4212_v34, 0.0  ;;  %vm1723_vm7 = vcmp.gt.f32.partialorder %v4235_v42, 0.0 }
  0x2d   :  { %v347_v45 = vpack.c.bf16 %v4240_v43, %v4235_v42  ;;  %v348_v48 = vpack.c.bf16 %v4254_v47, %v63_v46  ;;  %v65_v49 = vld [vmem:[%s5213_s24 + $0x30] sm:$0xff]  ;;  %v66_v50 = vld [vmem:[%s5213_s24 + $0x38] sm:$0xff]  ;;  %v67_v52 = vld [vmem:[%s5213_s24 + $0x40] sm:$0xff]  ;;  %vm1724_vm6 = vcmp.gt.f32.partialorder %v4240_v43, 0.0  ;;  %vm1726_vm8 = vcmp.gt.f32.partialorder %v4254_v47, 0.0 }
  0x2e   :  { %3039 = vmatmul.mubr.msk.bf16.vlgmr.msra.gmra.mrb[0].mxu0 %vm256_vm0, %v215_v7  ;;  %v349_v51 = vpack.c.bf16 %v66_v50, %v65_v49  ;;  %v68_v53 = vld [vmem:[%s5213_s24 + $0x48] sm:$0xff]  ;;  %v69_v55 = vld [vmem:[%s5213_s24 + $0x50] sm:$0xff]  ;;  %v70_v56 = vld [vmem:[%s5213_s24 + $0x58] sm:$0xff] }
  0x2f   :  { %423 = vmatprep.mubr.bf16.mxu0 %v4008_v2  ;;  %392 = vmatpush1.bf16.msra.mxu0 %v4219_v37  ;;  %v350_v54 = vpack.c.bf16 %v68_v53, %v67_v52  ;;  %v351_v57 = vpack.c.bf16 %v70_v56, %v69_v55  ;;  %v71_v58 = vld [vmem:[%s5213_s24 + $0x60] sm:$0xff]  ;;  %v72_v59 = vld [vmem:[%s5213_s24 + $0x68] sm:$0xff]  ;;  %v73_v5 = vld [vmem:[%s5213_s24 + $0x70] sm:$0xff] }
  0x30   :  { %v352_v60 = vpack.c.bf16 %v72_v59, %v71_v58  ;;  %v74_v6 = vld [vmem:[%s5213_s24 + $0x78] sm:$0xff]  ;;  %v3863_v32 = vld [vmem:[%s5193_s3 + $0x20] sm:$0xff]   ;;  %v3864_v36 = vld [vmem:[%s5193_s3 + $0x28] sm:$0xff]  }
  0x31   :  { %v353_v7 = vpack.c.bf16 %v74_v6, %v73_v5 }
  0x36   :  { %3044 = vmatmul.mubr.msk.bf16.vlgmr.msra.gmra.mrb[4].mxu0 %vm359_vm3, %v346_v38  ;;  %v3865_v38 = vld [vmem:[%s5193_s3 + $0x30] sm:$0xff]  }
  0x37   :  { %433 = vmatprep.mubr.bf16.mxu0 %v4008_v2 }
  0x3e   :  { %3045 = vmatmul.mubr.msk.bf16.gmra.mrb[8].mxu0 %vm359_vm3, %v347_v45 }
  0x3f   :  { %443 = vmatprep.mubr.bf16.mxu0 %v4008_v2 }
  0x46   :  { %3046 = vmatmul.mubr.msk.bf16.gmra.mrb[12].mxu0 %vm359_vm3, %v348_v48 }
  0x47   :  { %453 = vmatprep.mubr.bf16.mxu0 %v4008_v2 }
  0x4e   :  { %3047 = vmatmul.mubr.msk.bf16.gmra.mrb[16].mxu0 %vm359_vm3, %v349_v51 }
  0x4f   :  { %463 = vmatprep.mubr.bf16.mxu0 %v4008_v2 }
  0x56   :  { %3048 = vmatmul.mubr.msk.bf16.gmra.mrb[20].mxu0 %vm359_vm3, %v350_v54 }
  0x57   :  { %473 = vmatprep.mubr.bf16.mxu0 %v4008_v2 }
  0x5e   :  { %3049 = vmatmul.mubr.msk.bf16.gmra.mrb[24].mxu0 %vm359_vm3, %v351_v57 }
  0x5f   :  { %483 = vmatprep.mubr.bf16.mxu0 %v4008_v2 }
  0x66   :  { %3050 = vmatmul.mubr.msk.bf16.gmra.mrb[28].mxu0 %vm359_vm3, %v352_v60 }
  0x67   :  { %493 = vmatprep.mubr.bf16.mxu0 %v4008_v2 }
  0x6e   :  { %3051 = vmatmul.mubr.msk.bf16.gmra.mrb[32].mxu0 %vm359_vm3, %v353_v7 }
  0x6f   :  { %754 = vmatprep.mubr.bf16.mxu0 %v4008_v2 }
  0xe0   :  { %v4185_v21 = vpop.f32.mrb[0].mxu1 }
  0xe1   :  { %v339_v22 = vpop.f32.mrb[1].mxu1 }
  0xe2   :  { %v4187_v23 = vpop.f32.mrb[2].mxu1  ;;  %v504_v25 = vmax.f32 %v339_v22, 0.0 }
  0xe3   :  { %v343_v24 = vpop.f32.mrb[3].mxu1 }
  0xe4   :  { %v505_v26 = vmax.f32 %v343_v24, 0.0 }
  0xe6   :  { %v506_v27 = vpack.c.bf16 %v505_v26, %v504_v25  ;;  %v3859_v26 = vld [vmem:[%s5193_s3] sm:$0xff]  }
  0xe8   :  { %3371 = vmatmul.mubr.bf16.vlgmr.msra.gmra.mrb[4].mxu1 %v506_v27  ;;  %v3860_v27 = vld [vmem:[%s5193_s3 + $0x8] sm:$0xff]  }
  0xe9   :  { %643 = vmatprep.mubr.bf16.mxu1 %v4008_v2  ;;  %612 = vmatpush1.bf16.msra.mxu1 %v4198_v31 }
  0xea   :  { %3374 = vmatprep.subr.bf16.mxu1 %v3867_v8 }
 0x101   :  { %v4224_v39 = vpop.f32.mrb[0].mxu0 }
 0x102   :  { %v4226_v40 = vpop.f32.mrb[1].mxu0 }
 0x103   :  { %v4229_v41 = vpop.f32.mrb[2].mxu0 }
 0x104   :  { %v654_v44 = vpack.c.bf16 %v4229_v41, %v4224_v39  ;;  %v300_v3 = vpop.f32.mrb[3].mxu0  ;;  %v3866_v39 = vld [vmem:[%s5193_s3 + $0x38] sm:$0xff]   ;;  %v3873_v41 = vld [vmem:[%s5197_s7 + $0x30] sm:$0xff]  }
 0x105   :  { %v656_v4 = vpack.c.bf16 %v300_v3, %v4226_v40  ;;  %v3872_v40 = vld [vmem:[%s5197_s7 + $0x28] sm:$0xff]  }
 0x1bb   :  { %v589_v61 = vpop.f32.mrb[4].mxu1 }
 0x1bc   :  { %v3372_v62 = vpop.f32.mrb[5].mxu1 }
 0x1bd   :  { %v592_v63 = vpop.f32.mrb[6].mxu1 }
 0x1be   :  { %v596_v0 = vpack.c.bf16 %v592_v63, %v589_v61  ;;  %v3373_v1 = vpop.f32.mrb[7].mxu1 }
 0x1c0   :  { %3063 = vmatmul.mubr.msk.bf16.vlgmr.msra.gmra.mrb[8].mxu1 %vm359_vm3, %v596_v0 }
 0x1c1   :  { %3375 = vmatpush3.bf16.msra.mxu1 %v3867_v8 }
 0x1c2   :  { %3376 = vmatprep.subr.bf16.mxu1 %v3868_v10 }
 0x1c5   :  { %3377 = vmatpush3.bf16.msra.mxu1 %v3868_v10 }
 0x1c6   :  { %3378 = vmatprep.subr.bf16.mxu1 %v3869_v11 }
 0x1c9   :  { %3379 = vmatpush3.bf16.msra.mxu1 %v3869_v11 }
 0x1ca   :  { %3380 = vmatprep.subr.bf16.mxu1 %v3870_v12 }
 0x1cd   :  { %3381 = vmatpush3.bf16.msra.mxu1 %v3870_v12 }
 0x1ce   :  { %3382 = vmatprep.subr.bf16.mxu1 %v3871_v13 }
 0x1d1   :  { %3383 = vmatpush3.bf16.msra.mxu1 %v3871_v13 }
 0x1d2   :  { %3384 = vmatprep.subr.bf16.mxu1 %v3872_v40 }
 0x1d5   :  { %3385 = vmatpush3.bf16.msra.mxu1 %v3872_v40 }
 0x1d6   :  { %3386 = vmatprep.subr.bf16.mxu1 %v3873_v41 }
 0x1d9   :  { %3387 = vmatpush3.bf16.msra.mxu1 %v3873_v41 }
 0x293   :  { %v645_v14 = vpop.f32.mrb[8].mxu1 }
 0x294   :  { %v647_v15 = vpop.f32.mrb[9].mxu1 }
 0x295   :  { %v649_v16 = vpop.f32.mrb[10].mxu1 }
 0x296   :  { %v655_v22 = vpack.c.bf16 %v649_v16, %v645_v14  ;;  %v651_v24 = vpop.f32.mrb[11].mxu1 }
 0x297   :  { %v657_v25 = vpack.c.bf16 %v651_v24, %v647_v15 }
 0x298   :  { %722 = vmatprep.subr.bf16.mxu0 %v655_v22 }
 0x299   :  { %723 = vmatpush1.bf16.msra.mxu0 %v654_v44  ;;  %v3874_v44 = vld [vmem:[%s5197_s7 + $0x38] sm:$0xff]  }
 0x29a   :  { %724 = vmatprep.subr.bf16.mxu0 %v657_v25  ;;  %3388 = vmatprep.subr.bf16.mxu1 %v3874_v44 }
 0x29b   :  { %3389 = vmatpush3.bf16.msra.mxu1 %v3874_v44 }
 0x29c   :  { %3406 = vmatprep.subr.bf16.mxu1 %v4009_v9 }
 0x29d   :  { %725 = vmatpush1.bf16.msra.mxu0 %v656_v4 }
 0x29e   :  { %3426 = vmatprep.subr.bf16.mxu0 %v4009_v9 }
 0x2a0   :  { %3072 = vmatmul.mubr.msk.bf16.vlgmr.msra.gmra.mrb[4].mxu0 %vm256_vm0, %v3859_v26 }
 0x2a1   :  { %764 = vmatprep.mubr.bf16.mxu0 %v4008_v2 }
 0x2a8   :  { %3073 = vmatmul.mubr.msk.bf16.gmra.mrb[8].mxu0 %vm256_vm0, %v3860_v27 }
 0x2a9   :  { %774 = vmatprep.mubr.bf16.mxu0 %v4008_v2 }
 0x2b0   :  { %3074 = vmatmul.mubr.msk.bf16.gmra.mrb[12].mxu0 %vm256_vm0, %v3861_v28 }
 0x2b1   :  { %784 = vmatprep.mubr.bf16.mxu0 %v4008_v2 }
 0x2b8   :  { %3075 = vmatmul.mubr.msk.bf16.gmra.mrb[16].mxu0 %vm256_vm0, %v3862_v30 }
 0x2b9   :  { %794 = vmatprep.mubr.bf16.mxu0 %v4008_v2 }
 0x2c0   :  { %3076 = vmatmul.mubr.msk.bf16.gmra.mrb[20].mxu0 %vm256_vm0, %v3863_v32 }
 0x2c1   :  { %804 = vmatprep.mubr.bf16.mxu0 %v4008_v2 }
 0x2c8   :  { %3077 = vmatmul.mubr.msk.bf16.gmra.mrb[24].mxu0 %vm256_vm0, %v3864_v36 }
 0x2c9   :  { %814 = vmatprep.mubr.bf16.mxu0 %v4008_v2 }
 0x2d0   :  { %3078 = vmatmul.mubr.msk.bf16.gmra.mrb[28].mxu0 %vm256_vm0, %v3865_v38 }
 0x2d1   :  { %824 = vmatprep.mubr.bf16.mxu0 %v4008_v2 }
 0x2d8   :  { %3079 = vmatmul.mubr.msk.bf16.gmra.mrb[32].mxu0 %vm256_vm0, %v3866_v39 }
 0x2d9   :  { %3442 = vmatprep.mubr.msk.bf16.mxu0 %vm4010_vm1, %v4009_v9 }
 0x373   :  { %v756_v45 = vpop.f32.mrb[4].mxu0 }
 0x374   :  { %v758_v46 = vpop.f32.mrb[5].mxu0  ;;  %v851_v49 = vmax.f32 %v756_v45, 0.0 }
 0x375   :  { %v760_v48 = vpop.f32.mrb[6].mxu0  ;;  %v1381_v52 = vmax.f32 %v758_v46, 0.0 }
 0x376   :  { %v852_v50 = vmax.f32 %v760_v48, 0.0  ;;  %v762_v51 = vpop.f32.mrb[7].mxu0 }
 0x377   :  { %v1382_v53 = vmax.f32 %v762_v51, 0.0 }
 0x378   :  { %v867_v54 = vpack.c.bf16 %v852_v50, %v851_v49 }
 0x379   :  { %v4371_v55 = vpack.c.bf16 %v1382_v53, %v1381_v52 }
 0x37a   :  { %3390 = vmatprep.mubr.bf16.mxu1 %v867_v54 }
 0x37b   :  { %v766_v56 = vpop.f32.mrb[8].mxu0 }
 0x37c   :  { %v768_v57 = vpop.f32.mrb[9].mxu0  ;;  %v853_v59 = vmax.f32 %v766_v56, 0.0 }
 0x37d   :  { %v770_v58 = vpop.f32.mrb[10].mxu0  ;;  %v1383_v62 = vmax.f32 %v768_v57, 0.0 }
 0x37e   :  { %v854_v60 = vmax.f32 %v770_v58, 0.0  ;;  %v772_v61 = vpop.f32.mrb[11].mxu0 }
 0x37f   :  { %v1384_v63 = vmax.f32 %v772_v61, 0.0 }
 0x380   :  { %v868_v0 = vpack.c.bf16 %v854_v60, %v853_v59 }
 0x381   :  { %v4373_v1 = vpack.c.bf16 %v1384_v63, %v1383_v62 }
 0x382   :  { %3391 = vmatmul.mubr.bf16.vlgmr.msra.gmra.mrb[12].mxu1 %v868_v0 }
 0x383   :  { %v776_v3 = vpop.f32.mrb[12].mxu0 }
 0x384   :  { %v778_v4 = vpop.f32.mrb[13].mxu0  ;;  %v855_v6 = vmax.f32 %v776_v3, 0.0 }
 0x385   :  { %v780_v5 = vpop.f32.mrb[14].mxu0  ;;  %v1385_v10 = vmax.f32 %v778_v4, 0.0 }
 0x386   :  { %v856_v7 = vmax.f32 %v780_v5, 0.0  ;;  %v782_v8 = vpop.f32.mrb[15].mxu0 }
 0x387   :  { %v1386_v11 = vmax.f32 %v782_v8, 0.0 }
 0x388   :  { %v869_v12 = vpack.c.bf16 %v856_v7, %v855_v6 }
 0x389   :  { %v4375_v13 = vpack.c.bf16 %v1386_v11, %v1385_v10 }
 0x38a   :  { %3394 = vmatprep.mubr.bf16.mxu1 %v869_v12 }
 0x38b   :  { %v786_v14 = vpop.f32.mrb[16].mxu0 }
 0x38c   :  { %v788_v15 = vpop.f32.mrb[17].mxu0  ;;  %v857_v22 = vmax.f32 %v786_v14, 0.0 }
 0x38d   :  { %v790_v16 = vpop.f32.mrb[18].mxu0  ;;  %v1387_v26 = vmax.f32 %v788_v15, 0.0 }
 0x38e   :  { %v858_v24 = vmax.f32 %v790_v16, 0.0  ;;  %v792_v25 = vpop.f32.mrb[19].mxu0 }
 0x38f   :  { %v1388_v27 = vmax.f32 %v792_v25, 0.0 }
 0x390   :  { %v870_v28 = vpack.c.bf16 %v858_v24, %v857_v22 }
 0x391   :  { %v4377_v30 = vpack.c.bf16 %v1388_v27, %v1387_v26  ;;  %v3876_v26 = vld [vmem:[%s5198_s8] sm:$0xff]   ;;  %v3877_v27 = vld [vmem:[%s5198_s8 + $0x8] sm:$0xff]  }
 0x392   :  { %3395 = vmatmul.mubr.bf16.gmra.mrb[16].mxu1 %v870_v28  ;;  %3427 = vmatpush3.bf16.msra.mxu0 %v3876_v26  ;;  %v3878_v28 = vld [vmem:[%s5198_s8 + $0x10] sm:$0xff]  }
 0x393   :  { %v796_v32 = vpop.f32.mrb[20].mxu0  ;;  %3428 = vmatprep.subr.bf16.mxu0 %v4009_v9 }
 0x394   :  { %v798_v36 = vpop.f32.mrb[21].mxu0  ;;  %v859_v39 = vmax.f32 %v796_v32, 0.0  ;;  %v3879_v32 = vld [vmem:[%s5198_s8 + $0x18] sm:$0xff]  }
 0x395   :  { %v800_v38 = vpop.f32.mrb[22].mxu0  ;;  %v1389_v44 = vmax.f32 %v798_v36, 0.0  ;;  %v3880_v36 = vld [vmem:[%s5198_s8 + $0x20] sm:$0xff]  }
 0x396   :  { %v860_v40 = vmax.f32 %v800_v38, 0.0  ;;  %v802_v41 = vpop.f32.mrb[23].mxu0  ;;  %3429 = vmatpush3.bf16.msra.mxu0 %v3877_v27  ;;  %v3881_v38 = vld [vmem:[%s5198_s8 + $0x28] sm:$0xff]  }
 0x397   :  { %v1390_v45 = vmax.f32 %v802_v41, 0.0  ;;  %3430 = vmatprep.subr.bf16.mxu0 %v4009_v9 }
 0x398   :  { %v871_v46 = vpack.c.bf16 %v860_v40, %v859_v39  ;;  %v3882_v39 = vld [vmem:[%s5198_s8 + $0x30] sm:$0xff]  }
 0x399   :  { %v4379_v48 = vpack.c.bf16 %v1390_v45, %v1389_v44 }
 0x39a   :  { %3398 = vmatprep.mubr.bf16.mxu1 %v871_v46  ;;  %3431 = vmatpush3.bf16.msra.mxu0 %v3878_v28 }
 0x39b   :  { %v806_v49 = vpop.f32.mrb[24].mxu0  ;;  %3432 = vmatprep.subr.bf16.mxu0 %v4009_v9 }
 0x39c   :  { %v808_v50 = vpop.f32.mrb[25].mxu0  ;;  %v861_v52 = vmax.f32 %v806_v49, 0.0 }
 0x39d   :  { %v810_v51 = vpop.f32.mrb[26].mxu0  ;;  %v1391_v56 = vmax.f32 %v808_v50, 0.0 }
 0x39e   :  { %v862_v53 = vmax.f32 %v810_v51, 0.0  ;;  %v812_v54 = vpop.f32.mrb[27].mxu0  ;;  %3433 = vmatpush3.bf16.msra.mxu0 %v3879_v32 }
 0x39f   :  { %v1392_v57 = vmax.f32 %v812_v54, 0.0  ;;  %3434 = vmatprep.subr.bf16.mxu0 %v4009_v9 }
 0x3a0   :  { %v872_v58 = vpack.c.bf16 %v862_v53, %v861_v52 }
 0x3a1   :  { %v4381_v59 = vpack.c.bf16 %v1392_v57, %v1391_v56 }
 0x3a2   :  { %3399 = vmatmul.mubr.bf16.gmra.mrb[20].mxu1 %v872_v58  ;;  %3435 = vmatpush3.bf16.msra.mxu0 %v3880_v36 }
 0x3a3   :  { %v816_v60 = vpop.f32.mrb[28].mxu0  ;;  %3436 = vmatprep.subr.bf16.mxu0 %v4009_v9 }
 0x3a4   :  { %v818_v61 = vpop.f32.mrb[29].mxu0  ;;  %v863_v63 = vmax.f32 %v816_v60, 0.0 }
 0x3a5   :  { %v820_v62 = vpop.f32.mrb[30].mxu0  ;;  %v1393_v4 = vmax.f32 %v818_v61, 0.0 }
 0x3a6   :  { %v864_v0 = vmax.f32 %v820_v62, 0.0  ;;  %v822_v3 = vpop.f32.mrb[31].mxu0  ;;  %3437 = vmatpush3.bf16.msra.mxu0 %v3881_v38 }
 0x3a7   :  { %v1394_v5 = vmax.f32 %v822_v3, 0.0  ;;  %3438 = vmatprep.subr.bf16.mxu0 %v4009_v9 }
 0x3a8   :  { %v873_v6 = vpack.c.bf16 %v864_v0, %v863_v63 }
 0x3a9   :  { %v4383_v7 = vpack.c.bf16 %v1394_v5, %v1393_v4 }
 0x3aa   :  { %3402 = vmatprep.mubr.bf16.mxu1 %v873_v6  ;;  %3439 = vmatpush3.bf16.msra.mxu0 %v3882_v39 }
 0x3ab   :  { %v826_v8 = vpop.f32.mrb[32].mxu0  ;;  %3440 = vmatprep.subr.bf16.mxu0 %v4009_v9 }
 0x3ac   :  { %v828_v10 = vpop.f32.mrb[33].mxu0  ;;  %v865_v12 = vmax.f32 %v826_v8, 0.0 }
 0x3ad   :  { %v830_v11 = vpop.f32.mrb[34].mxu0  ;;  %v1395_v16 = vmax.f32 %v828_v10, 0.0 }
 0x3ae   :  { %v866_v14 = vmax.f32 %v830_v11, 0.0  ;;  %v832_v15 = vpop.f32.mrb[35].mxu0 }
 0x3af   :  { %v1396_v22 = vmax.f32 %v832_v15, 0.0 }
 0x3b0   :  { %v874_v24 = vpack.c.bf16 %v866_v14, %v865_v12 }
 0x3b1   :  { %v4385_v25 = vpack.c.bf16 %v1396_v22, %v1395_v16 }
 0x3b2   :  { %3403 = vmatmul.mubr.bf16.gmra.mrb[24].mxu1 %v874_v24 }
 0x3b3   :  { %3422 = vmatprep.mubr.msk.bf16.mxu1 %vm4010_vm1, %v4009_v9 }
 0x455   :  { %v3392_v40 = vpop.f32.mrb[12].mxu1 }
 0x456   :  { %v957_v41 = vpop.f32.mrb[13].mxu1  ;;  %v1022_v45 = vmax.f32 %v3392_v40, 0.0 }
 0x457   :  { %v3393_v44 = vpop.f32.mrb[14].mxu1  ;;  %v1020_v50 = vmax.f32 %v957_v41, 0.0  ;;  %v3875_v41 = vld [vmem:[%s5192_s2] sm:$0xff]  }
 0x458   :  { %v1023_v46 = vmax.f32 %v3393_v44, 0.0  ;;  %v960_v49 = vpop.f32.mrb[15].mxu1  ;;  %v3883_v44 = vld [vmem:[%s5198_s8 + $0x38] sm:$0xff]  }
 0x459   :  { %v1021_v51 = vmax.f32 %v960_v49, 0.0  ;;  %3441 = vmatpush3.bf16.msra.mxu0 %v3883_v44  ;;  %v4450_v49 = vld [vmem:[%s5199_s9 + $0x10] sm:$0xff]  }
 0x45a   :  { %v1037_v52 = vpack.c.bf16 %v1023_v46, %v1022_v45  ;;  %3466 = vmatprep.subr.bf16.mxu0 %v4009_v9  ;;  %v4437_v45 = vld [vmem:[%s5199_s9] sm:$0xff]   ;;  %v4443_v46 = vld [vmem:[%s5199_s9 + $0x8] sm:$0xff]   ;;  %v4618_v44 = vld [vmem:[%s5203_s13 + $0x30] sm:$0xff]  }
 0x45b   :  { %v1036_v53 = vpack.c.bf16 %v1021_v51, %v1020_v50  ;;  %v4457_v50 = vld [vmem:[%s5199_s9 + $0x18] sm:$0xff]   ;;  %v4464_v51 = vld [vmem:[%s5199_s9 + $0x20] sm:$0xff]  }
 0x45d   :  { %3407 = vmatpush3.bf16.msra.mxu1 %v1036_v53 }
 0x45e   :  { %3408 = vmatprep.subr.bf16.mxu1 %v4009_v9 }
 0x461   :  { %3409 = vmatpush3.bf16.msra.mxu1 %v1037_v52  ;;  %v4471_v52 = vld [vmem:[%s5199_s9 + $0x28] sm:$0xff]  }
 0x462   :  { %3410 = vmatprep.subr.bf16.mxu1 %v4009_v9 }
 0x465   :  { %v3396_v54 = vpop.f32.mrb[16].mxu1 }
 0x466   :  { %v973_v56 = vpop.f32.mrb[17].mxu1  ;;  %v1026_v58 = vmax.f32 %v3396_v54, 0.0 }
 0x467   :  { %v3397_v57 = vpop.f32.mrb[18].mxu1  ;;  %v1024_v62 = vmax.f32 %v973_v56, 0.0 }
 0x468   :  { %v1027_v60 = vmax.f32 %v3397_v57, 0.0  ;;  %v976_v61 = vpop.f32.mrb[19].mxu1 }
 0x469   :  { %v1025_v63 = vmax.f32 %v976_v61, 0.0  ;;  %v4488_v61 = vld [vmem:[%s5199_s9 + $0x38] sm:$0xff]  }
 0x46a   :  { %v1039_v0 = vpack.c.bf16 %v1027_v60, %v1026_v58  ;;  %v4481_v60 = vld [vmem:[%s5199_s9 + $0x30] sm:$0xff]  }
 0x46b   :  { %v1038_v3 = vpack.c.bf16 %v1025_v63, %v1024_v62  ;;  %v4494_v62 = vld [vmem:[%s5202_s12] sm:$0xff]  }
 0x46c   :  { %v3900_v63 = vld [vmem:[%s5200_s10] sm:$0xff]  }
 0x46d   :  { %3411 = vmatpush3.bf16.msra.mxu1 %v1038_v3  ;;  %v3902_v3 = vld [vmem:[%s5200_s10 + $0x10] sm:$0xff]  }
 0x46e   :  { %3412 = vmatprep.subr.bf16.mxu1 %v4009_v9 }
 0x471   :  { %3413 = vmatpush3.bf16.msra.mxu1 %v1039_v0  ;;  %v3901_v0 = vld [vmem:[%s5200_s10 + $0x8] sm:$0xff]  }
 0x472   :  { %3414 = vmatprep.subr.bf16.mxu1 %v4009_v9 }
 0x475   :  { %v3400_v4 = vpop.f32.mrb[20].mxu1 }
 0x476   :  { %v989_v5 = vpop.f32.mrb[21].mxu1  ;;  %v1030_v8 = vmax.f32 %v3400_v4, 0.0  ;;  %v3903_v4 = vld [vmem:[%s5200_s10 + $0x18] sm:$0xff]  }
 0x477   :  { %v3401_v6 = vpop.f32.mrb[22].mxu1  ;;  %v1028_v12 = vmax.f32 %v989_v5, 0.0  ;;  %v3904_v5 = vld [vmem:[%s5200_s10 + $0x20] sm:$0xff]  }
 0x478   :  { %v1031_v10 = vmax.f32 %v3401_v6, 0.0  ;;  %v992_v11 = vpop.f32.mrb[23].mxu1  ;;  %v3905_v6 = vld [vmem:[%s5200_s10 + $0x28] sm:$0xff]  }
 0x479   :  { %v1029_v14 = vmax.f32 %v992_v11, 0.0 }
 0x47a   :  { %v1041_v15 = vpack.c.bf16 %v1031_v10, %v1030_v8 }
 0x47b   :  { %v1040_v16 = vpack.c.bf16 %v1029_v14, %v1028_v12 }
 0x47d   :  { %3415 = vmatpush3.bf16.msra.mxu1 %v1040_v16 }
 0x47e   :  { %3416 = vmatprep.subr.bf16.mxu1 %v4009_v9 }
 0x481   :  { %3417 = vmatpush3.bf16.msra.mxu1 %v1041_v15 }
 0x482   :  { %3418 = vmatprep.subr.bf16.mxu1 %v4009_v9 }
 0x485   :  { %v3404_v22 = vpop.f32.mrb[24].mxu1 }
 0x486   :  { %v1005_v24 = vpop.f32.mrb[25].mxu1  ;;  %v1034_v27 = vmax.f32 %v3404_v22, 0.0 }
 0x487   :  { %v3405_v26 = vpop.f32.mrb[26].mxu1  ;;  %v1032_v36 = vmax.f32 %v1005_v24, 0.0 }
 0x488   :  { %v1035_v28 = vmax.f32 %v3405_v26, 0.0  ;;  %v1008_v32 = vpop.f32.mrb[27].mxu1  ;;  %v3893_v26 = vld [vmem:[%s5202_s12 + $0x8] sm:$0xff]  }
 0x489   :  { %v1033_v38 = vmax.f32 %v1008_v32, 0.0  ;;  %v3899_v32 = vld [vmem:[%s5202_s12 + $0x38] sm:$0xff]  }
 0x48a   :  { %v1043_v39 = vpack.c.bf16 %v1035_v28, %v1034_v27  ;;  %v3896_v27 = vld [vmem:[%s5202_s12 + $0x20] sm:$0xff]   ;;  %v3898_v28 = vld [vmem:[%s5202_s12 + $0x30] sm:$0xff]  }
 0x48b   :  { %v1042_v40 = vpack.c.bf16 %v1033_v38, %v1032_v36  ;;  %v3916_v36 = vld [vmem:[%s5194_s4 + $0xc] ss:$16 sps:$4 sm:$0xff]   ;;  %v4590_v38 = vld [vmem:[%s5203_s13 + $0x10] sm:$0xff]  }
 0x48d   :  { %3419 = vmatpush3.bf16.msra.mxu1 %v1042_v40  ;;  %v4604_v40 = vld [vmem:[%s5203_s13 + $0x20] sm:$0xff]  }
 0x48e   :  { %3420 = vmatprep.subr.bf16.mxu1 %v4009_v9 }
 0x491   :  { %3421 = vmatpush3.bf16.msra.mxu1 %v1043_v39  ;;  %v4597_v39 = vld [vmem:[%s5203_s13 + $0x18] sm:$0xff]  }
 0x492   :  { %3446 = vmatprep.subr.bf16.mxu1 %v4009_v9 }
 0x494   :  { %3423 = vmatmul.mubr.bf16.vlgmr.msra.gmra.mrb[28].mxu1 %v3875_v41  ;;  %v4611_v41 = vld [vmem:[%s5203_s13 + $0x28] sm:$0xff]  }
 0x495   :  { %3462 = vmatprep.mubr.msk.bf16.mxu1 %vm4010_vm1, %v4009_v9  ;;  %3447 = vmatpush3.bf16.msra.mxu1 %v4437_v45 }
 0x496   :  { %3448 = vmatprep.subr.bf16.mxu1 %v4009_v9 }
 0x499   :  { %3449 = vmatpush3.bf16.msra.mxu1 %v4443_v46 }
 0x49a   :  { %3450 = vmatprep.subr.bf16.mxu1 %v4009_v9 }
 0x49d   :  { %3451 = vmatpush3.bf16.msra.mxu1 %v4450_v49 }
 0x49e   :  { %3452 = vmatprep.subr.bf16.mxu1 %v4009_v9 }
 0x4a1   :  { %3453 = vmatpush3.bf16.msra.mxu1 %v4457_v50 }
 0x4a2   :  { %3454 = vmatprep.subr.bf16.mxu1 %v4009_v9 }
 0x4a5   :  { %3455 = vmatpush3.bf16.msra.mxu1 %v4464_v51 }
 0x4a6   :  { %3456 = vmatprep.subr.bf16.mxu1 %v4009_v9 }
 0x4a9   :  { %3457 = vmatpush3.bf16.msra.mxu1 %v4471_v52 }
 0x4aa   :  { %3458 = vmatprep.subr.bf16.mxu1 %v4009_v9 }
 0x4ad   :  { %3459 = vmatpush3.bf16.msra.mxu1 %v4481_v60 }
 0x4ae   :  { %3460 = vmatprep.subr.bf16.mxu1 %v4009_v9 }
 0x4b1   :  { %3461 = vmatpush3.bf16.msra.mxu1 %v4488_v61 }
 0x4b2   :  { %3486 = vmatprep.subr.bf16.mxu1 %v4494_v62 }
 0x567   :  { %v1084_v53 = vpop.f32.mrb[28].mxu1 }
 0x568   :  { %v3424_v54 = vpop.f32.mrb[29].mxu1 }
 0x569   :  { %v1087_v56 = vpop.f32.mrb[30].mxu1 }
 0x56a   :  { %v1091_v57 = vpack.c.bf16 %v1087_v56, %v1084_v53  ;;  %v3425_v58 = vpop.f32.mrb[31].mxu1  ;;  %v4625_v53 = vld [vmem:[%s5203_s13 + $0x38] sm:$0xff]  }
 0x56c   :  { %3443 = vmatmul.mubr.bf16.vlgmr.msra.gmra.mrb[36].mxu0 %v1091_v57 }
 0x56d   :  { %3482 = vmatprep.mubr.msk.bf16.mxu0 %vm4010_vm1, %v4009_v9  ;;  %3467 = vmatpush3.bf16.msra.mxu0 %v3900_v63 }
 0x56e   :  { %3468 = vmatprep.subr.bf16.mxu0 %v4009_v9 }
 0x571   :  { %3469 = vmatpush3.bf16.msra.mxu0 %v3901_v0 }
 0x572   :  { %3470 = vmatprep.subr.bf16.mxu0 %v4009_v9 }
 0x575   :  { %3471 = vmatpush3.bf16.msra.mxu0 %v3902_v3 }
 0x576   :  { %3472 = vmatprep.subr.bf16.mxu0 %v4009_v9 }
 0x579   :  { %3473 = vmatpush3.bf16.msra.mxu0 %v3903_v4 }
 0x57a   :  { %3474 = vmatprep.subr.bf16.mxu0 %v4009_v9 }
 0x57d   :  { %3475 = vmatpush3.bf16.msra.mxu0 %v3904_v5 }
 0x57e   :  { %3476 = vmatprep.subr.bf16.mxu0 %v4009_v9 }
 0x581   :  { %3477 = vmatpush3.bf16.msra.mxu0 %v3905_v6 }
 0x582   :  { %3478 = vmatprep.subr.bf16.mxu0 %v4009_v9 }
 0x63f   :  { %v1174_v8 = vpop.f32.mrb[36].mxu0 }
 0x640   :  { %v1175_v10 = vadd.f32 %v1174_v8, %v4185_v21  ;;  %v3444_v11 = vpop.f32.mrb[37].mxu0  ;;  %v3894_v21 = vld [vmem:[%s5202_s12 + $0x10] sm:$0xff]  }
 0x641   :  { %v1177_v12 = vpop.f32.mrb[38].mxu0 }
 0x642   :  { %v1178_v14 = vadd.f32 %v1177_v12, %v4187_v23  ;;  %v3445_v15 = vpop.f32.mrb[39].mxu0  ;;  %v1181_v16 = vmax.f32 %v1175_v10, 0.0  ;;  %v3895_v23 = vld [vmem:[%s5202_s12 + $0x18] sm:$0xff]   ;;  %v3917_v12 = vld [vmem:[%s5195_s5] sm:$0xff]  }
 0x644   :  { %v1182_v22 = vmax.f32 %v1178_v14, 0.0 }
 0x646   :  { %v1183_v24 = vpack.c.bf16 %v1182_v22, %v1181_v16 }
 0x648   :  { %3463 = vmatmul.mubr.bf16.vlgmr.msra.gmra.mrb[32].mxu1 %v1183_v24 }
 0x649   :  { %3487 = vmatpush3.bf16.msra.mxu1 %v4494_v62  ;;  %3502 = vmatprep.mubr.bf16.mxu1 %v4371_v55  ;;  %v3897_v55 = vld [vmem:[%s5202_s12 + $0x28] sm:$0xff]  }
 0x64a   :  { %3488 = vmatprep.subr.bf16.mxu1 %v3893_v26 }
 0x64d   :  { %3489 = vmatpush3.bf16.msra.mxu1 %v3893_v26 }
 0x64e   :  { %3490 = vmatprep.subr.bf16.mxu1 %v3894_v21 }
 0x651   :  { %3491 = vmatpush3.bf16.msra.mxu1 %v3894_v21 }
 0x652   :  { %3492 = vmatprep.subr.bf16.mxu1 %v3895_v23 }
 0x655   :  { %3493 = vmatpush3.bf16.msra.mxu1 %v3895_v23  ;;  %v3918_v23 = vld [vmem:[%s5195_s5 + $0x8] sm:$0xff]  }
 0x656   :  { %3494 = vmatprep.subr.bf16.mxu1 %v3896_v27 }
 0x659   :  { %3495 = vmatpush3.bf16.msra.mxu1 %v3896_v27 }
 0x65a   :  { %3496 = vmatprep.subr.bf16.mxu1 %v3897_v55 }
 0x65d   :  { %3497 = vmatpush3.bf16.msra.mxu1 %v3897_v55 }
 0x65e   :  { %3498 = vmatprep.subr.bf16.mxu1 %v3898_v28 }
 0x661   :  { %3499 = vmatpush3.bf16.msra.mxu1 %v3898_v28 }
 0x662   :  { %3500 = vmatprep.subr.bf16.mxu1 %v3899_v32 }
 0x665   :  { %3501 = vmatpush3.bf16.msra.mxu1 %v3899_v32  ;;  %v3919_v32 = vld [vmem:[%s5195_s5 + $0x10] sm:$0xff]  }
 0x666   :  { %1773 = vmatprep.subr.bf16.mxu1 %v4162_v17  ;;  %v4564_v17 = vld [vmem:[%s5200_s10 + $0x30] sm:$0xff]  }
 0x667   :  { %3479 = vmatpush3.bf16.msra.mxu0 %v4564_v17 }
 0x668   :  { %3503 = vmatmul.mubr.bf16.vlgmr.msra.gmra.mrb[36].mxu1 %v4373_v1  ;;  %3480 = vmatprep.subr.bf16.mxu0 %v4009_v9 }
 0x669   :  { %3506 = vmatprep.mubr.bf16.mxu1 %v4375_v13  ;;  %1774 = vmatpush1.bf16.msra.mxu1 %v4167_v18  ;;  %v4571_v18 = vld [vmem:[%s5200_s10 + $0x38] sm:$0xff]  }
 0x66a   :  { %1775 = vmatprep.subr.bf16.mxu1 %v4172_v19  ;;  %v4577_v19 = vld [vmem:[%s5203_s13] sm:$0xff]  }
 0x66b   :  { %3481 = vmatpush3.bf16.msra.mxu0 %v4571_v18 }
 0x66c   :  { %3518 = vmatprep.subr.bf16.mxu0 %v4577_v19 }
 0x66d   :  { %1776 = vmatpush1.bf16.msra.mxu1 %v4179_v20 }
 0x66e   :  { %1816 = vmatprep.subr.bf16.mxu1 %v3916_v36 }
 0x670   :  { %3507 = vmatmul.mubr.bf16.gmra.mrb[40].mxu1 %v4377_v30 }
 0x671   :  { %3510 = vmatprep.mubr.bf16.mxu1 %v4379_v48 }
 0x678   :  { %3511 = vmatmul.mubr.bf16.gmra.mrb[44].mxu1 %v4381_v59 }
 0x679   :  { %3514 = vmatprep.mubr.bf16.mxu1 %v4383_v7 }
 0x680   :  { %3515 = vmatmul.mubr.bf16.gmra.mrb[48].mxu1 %v4385_v25  ;;  %v4583_v25 = vld [vmem:[%s5203_s13 + $0x8] sm:$0xff]  }
 0x681   :  { %1805 = vmatprep.mubr.bf16.mxu1 %v4008_v2 }
 0x71b   :  { %v1266_v20 = vpop.f32.mrb[32].mxu1 }
 0x71c   :  { %v3464_v1 = vpop.f32.mrb[33].mxu1  ;;  %v1273_v30 = vmax.f32 %v1266_v20, 0.0 }
 0x71d   :  { %v1269_v13 = vpop.f32.mrb[34].mxu1 }
 0x71e   :  { %v1274_v48 = vmax.f32 %v1269_v13, 0.0  ;;  %v3465_v59 = vpop.f32.mrb[35].mxu1 }
 0x720   :  { %v1275_v7 = vpack.c.bf16 %v1274_v48, %v1273_v30 }
 0x722   :  { %3483 = vmatmul.mubr.bf16.vlgmr.msra.gmra.mrb[40].mxu0 %v1275_v7  ;;  %v3920_v7 = vld [vmem:[%s5195_s5 + $0x18] sm:$0xff]  }
 0x723   :  { %3519 = vmatpush3.bf16.msra.mxu0 %v4577_v19 }
 0x724   :  { %3520 = vmatprep.subr.bf16.mxu0 %v4583_v25 }
 0x727   :  { %3521 = vmatpush3.bf16.msra.mxu0 %v4583_v25 }
 0x728   :  { %3522 = vmatprep.subr.bf16.mxu0 %v4590_v38 }
 0x72b   :  { %3523 = vmatpush3.bf16.msra.mxu0 %v4590_v38 }
 0x72c   :  { %3524 = vmatprep.subr.bf16.mxu0 %v4597_v39 }
 0x72f   :  { %3525 = vmatpush3.bf16.msra.mxu0 %v4597_v39 }
 0x730   :  { %3526 = vmatprep.subr.bf16.mxu0 %v4604_v40 }
 0x733   :  { %3527 = vmatpush3.bf16.msra.mxu0 %v4604_v40 }
 0x734   :  { %3528 = vmatprep.subr.bf16.mxu0 %v4611_v41 }
 0x737   :  { %3529 = vmatpush3.bf16.msra.mxu0 %v4611_v41 }
 0x738   :  { %3530 = vmatprep.subr.bf16.mxu0 %v4618_v44 }
 0x73b   :  { %v3504_v54 = vpop.f32.mrb[36].mxu1  ;;  %3531 = vmatpush3.bf16.msra.mxu0 %v4618_v44 }
 0x73c   :  { %v1487_v56 = vpop.f32.mrb[37].mxu1  ;;  %3532 = vmatprep.subr.bf16.mxu0 %v4625_v53  ;;  %v1552_v58 = vmax.f32 %v3504_v54, 0.0 }
 0x73d   :  { %v3505_v57 = vpop.f32.mrb[38].mxu1  ;;  %v1550_v3 = vmax.f32 %v1487_v56, 0.0 }
 0x73e   :  { %v1553_v63 = vmax.f32 %v3505_v57, 0.0  ;;  %v1490_v0 = vpop.f32.mrb[39].mxu1 }
 0x73f   :  { %v1551_v4 = vmax.f32 %v1490_v0, 0.0  ;;  %3533 = vmatpush3.bf16.msra.mxu0 %v4625_v53 }
 0x740   :  { %v1567_v5 = vpack.c.bf16 %v1553_v63, %v1552_v58  ;;  %3550 = vmatprep.subr.bf16.mxu0 %v4009_v9  ;;  %v3921_v58 = vld [vmem:[%s5195_s5 + $0x20] sm:$0xff]  }
 0x741   :  { %v1566_v6 = vpack.c.bf16 %v1551_v4, %v1550_v3 }
 0x743   :  { %v3508_v8 = vpop.f32.mrb[40].mxu1  ;;  %3534 = vmatprep.mubr.bf16.mxu0 %v1566_v6 }
 0x744   :  { %v1503_v10 = vpop.f32.mrb[41].mxu1  ;;  %3535 = vmatmul.mubr.bf16.vlgmr.msra.gmra.mrb[44].mxu0 %v1567_v5  ;;  %v1556_v14 = vmax.f32 %v3508_v8, 0.0 }
 0x745   :  { %v3509_v11 = vpop.f32.mrb[42].mxu1  ;;  %3551 = vmatpush3.bf16.msra.mxu0 %v3917_v12  ;;  %v1554_v22 = vmax.f32 %v1503_v10, 0.0  ;;  %v3922_v10 = vld [vmem:[%s5195_s5 + $0x28] sm:$0xff]   ;;  %v3924_v12 = vld [vmem:[%s5195_s5 + $0x38] sm:$0xff]  }
 0x746   :  { %v1557_v15 = vmax.f32 %v3509_v11, 0.0  ;;  %v1506_v16 = vpop.f32.mrb[43].mxu1  ;;  %3552 = vmatprep.subr.bf16.mxu0 %v4009_v9  ;;  %v3923_v11 = vld [vmem:[%s5195_s5 + $0x30] sm:$0xff]  }
 0x747   :  { %v1555_v24 = vmax.f32 %v1506_v16, 0.0 }
 0x748   :  { %v1569_v26 = vpack.c.bf16 %v1557_v15, %v1556_v14 }
 0x749   :  { %v1568_v21 = vpack.c.bf16 %v1555_v24, %v1554_v22  ;;  %3553 = vmatpush3.bf16.msra.mxu0 %v3918_v23  ;;  %v3925_v22 = vld [vmem:[%s5212_s1] sm:$0xff] }
 0x74a   :  { %3554 = vmatprep.subr.bf16.mxu0 %v4009_v9 }
 0x74b   :  { %v3512_v27 = vpop.f32.mrb[44].mxu1  ;;  %3538 = vmatprep.mubr.bf16.mxu0 %v1568_v21 }
 0x74c   :  { %v1519_v55 = vpop.f32.mrb[45].mxu1  ;;  %3539 = vmatmul.mubr.bf16.gmra.mrb[48].mxu0 %v1569_v26  ;;  %v1560_v36 = vmax.f32 %v3512_v27, 0.0  ;;  %v3926_v26 = vld [vmem:[%s5212_s1 + $0x8] sm:$0xff] }
 0x74d   :  { %v3513_v28 = vpop.f32.mrb[46].mxu1  ;;  %3555 = vmatpush3.bf16.msra.mxu0 %v3919_v32  ;;  %v1558_v13 = vmax.f32 %v1519_v55, 0.0  ;;  %v3928_v55 = vld [vmem:[%s5194_s4 + $0x2c] ss:$16 sps:$4 sm:$0xff]  }
 0x74e   :  { %v1561_v20 = vmax.f32 %v3513_v28, 0.0  ;;  %v1522_v1 = vpop.f32.mrb[47].mxu1  ;;  %3556 = vmatprep.subr.bf16.mxu0 %v4009_v9  ;;  %v3929_v28 = vld [vmem:[%s5194_s4 + $0x28] ss:$16 sps:$4 sm:$0xff]  }
 0x74f   :  { %v1559_v30 = vmax.f32 %v1522_v1, 0.0 }
 0x750   :  { %v1571_v48 = vpack.c.bf16 %v1561_v20, %v1560_v36 }
 0x751   :  { %v1570_v59 = vpack.c.bf16 %v1559_v30, %v1558_v13  ;;  %3557 = vmatpush3.bf16.msra.mxu0 %v3920_v7 }
 0x752   :  { %3558 = vmatprep.subr.bf16.mxu0 %v4009_v9 }
 0x753   :  { %v3516_v54 = vpop.f32.mrb[48].mxu1  ;;  %3542 = vmatprep.mubr.bf16.mxu0 %v1570_v59 }
 0x754   :  { %v1535_v56 = vpop.f32.mrb[49].mxu1  ;;  %3543 = vmatmul.mubr.bf16.gmra.mrb[52].mxu0 %v1571_v48  ;;  %v1564_v63 = vmax.f32 %v3516_v54, 0.0 }
 0x755   :  { %v3517_v57 = vpop.f32.mrb[50].mxu1  ;;  %3559 = vmatpush3.bf16.msra.mxu0 %v3921_v58  ;;  %v1562_v4 = vmax.f32 %v1535_v56, 0.0 }
 0x756   :  { %v1565_v0 = vmax.f32 %v3517_v57, 0.0  ;;  %v1538_v3 = vpop.f32.mrb[51].mxu1  ;;  %3560 = vmatprep.subr.bf16.mxu0 %v4009_v9 }
 0x757   :  { %v1563_v5 = vmax.f32 %v1538_v3, 0.0 }
 0x758   :  { %v1573_v6 = vpack.c.bf16 %v1565_v0, %v1564_v63  ;;  %v3932_v0 = vld [vmem:[%s5213_s24 + $0x10] sm:$0xff] }
 0x759   :  { %v1572_v8 = vpack.c.bf16 %v1563_v5, %v1562_v4  ;;  %3561 = vmatpush3.bf16.msra.mxu0 %v3922_v10 }
 0x75a   :  { %3562 = vmatprep.subr.bf16.mxu0 %v4009_v9 }
 0x75b   :  { %3546 = vmatprep.mubr.bf16.mxu0 %v1572_v8 }
 0x75c   :  { %3547 = vmatmul.mubr.bf16.gmra.mrb[56].mxu0 %v1573_v6 }
 0x75d   :  { %3563 = vmatpush3.bf16.msra.mxu0 %v3923_v11  ;;  %3566 = vmatprep.mubr.msk.bf16.mxu0 %vm4010_vm1, %v4009_v9 }
 0x75e   :  { %3564 = vmatprep.subr.bf16.mxu0 %v4009_v9 }
 0x761   :  { %3565 = vmatpush3.bf16.msra.mxu0 %v3924_v12  ;;  %v3934_v12 = vld [vmem:[%s5213_s24 + $0x28] sm:$0xff] }
 0x762   :  { %3140 = vmatprep.subr.msk.bf16.mxu0 %vm384_vm2, %v4193_v29  ;;  %v3927_v29 = vld [vmem:[%s5194_s4 + $0x8] ss:$16 sps:$4 sm:$0xff]  }
 0x7f5   :  { %v1358_v14 = vpop.f32.mrb[40].mxu0 }
 0x7f6   :  { %v3484_v15 = vpop.f32.mrb[41].mxu0  ;;  %v4669_v24 = vadd.f32 %v3925_v22, %v1358_v14 }
 0x7f7   :  { %v1361_v16 = vpop.f32.mrb[42].mxu0 }
 0x7f8   :  { %v4674_v21 = vadd.f32 %v3926_v26, %v1361_v16  ;;  %v3485_v23 = vpop.f32.mrb[43].mxu0  ;;  %v3935_v16 = vld [vmem:[%s5213_s24 + $0x38] sm:$0xff] }
 0x7f9   :  { %vm1728_vm10 = vcmp.gt.f32.partialorder %v3935_v16, 0.0 }
 0x7fa   :  { %v1769_v27 = vpack.c.bf16 %v4674_v21, %v4669_v24 }
 0x7fc   :  { %3129 = vmatmul.mubr.msk.bf16.vlgmr.msra.gmra.mrb[52].mxu1 %vm256_vm0, %v1769_v27 }
 0x7fd   :  { %1817 = vmatpush1.bf16.msra.mxu1 %v3927_v29  ;;  %1848 = vmatprep.mubr.bf16.mxu1 %v4008_v2 }
 0x7fe   :  { %1818 = vmatprep.subr.bf16.mxu1 %v3928_v55 }
 0x801   :  { %1819 = vmatpush1.bf16.msra.mxu1 %v3929_v28 }
 0x802   :  { %3131 = vmatprep.subr.msk.bf16.mxu1 %vm384_vm2, %v4214_v35  ;;  %v3930_v35 = vld [vmem:[%s5213_s24] sm:$0xff] }
 0x804   :  { %3130 = vmatmul.mubr.msk.bf16.vlgmr.msra.gmra.mrb[56].mxu1 %vm256_vm0, %v1769_v27  ;;  %v3936_v27 = vld [vmem:[%s5213_s24 + $0x30] sm:$0xff] }
 0x805   :  { %1892 = vmatpush1.bf16.msra.mxu1 %v4219_v37  ;;  %1923 = vmatprep.mubr.bf16.mxu1 %v4008_v2  ;;  %v3931_v37 = vld [vmem:[%s5213_s24 + $0x8] sm:$0xff]  ;;  %vm1727_vm11 = vcmp.gt.f32.partialorder %v3936_v27, 0.0 }
 0x817   :  { %v3536_v32 = vpop.f32.mrb[44].mxu0 }
 0x818   :  { %v1656_v36 = vpop.f32.mrb[45].mxu0  ;;  %v1739_v56 = vadd.f32 %v3536_v32, %v4235_v42  ;;  %v3933_v42 = vld [vmem:[%s5213_s24 + $0x20] sm:$0xff] }
 0x819   :  { %v1737_v20 = vadd.f32 %v1656_v36, %v4207_v33  ;;  %v3537_v1 = vpop.f32.mrb[46].mxu0  ;;  %vm1725_vm9 = vcmp.gt.f32.partialorder %v3933_v42, 0.0 }
 0x81a   :  { %v1659_v13 = vpop.f32.mrb[47].mxu0  ;;  %v1740_v7 = vadd.f32 %v3537_v1, %v4240_v43  ;;  %v4722_v3 = vsel %vm1723_vm7, %v1739_v56, %v3932_v0  ;;  %v3937_v1 = vld [vmem:[%s5213_s24 + $0x48] sm:$0xff]  ;;  %v3940_v56 = vld [vmem:[%s5213_s24 + $0x50] sm:$0xff] }
 0x81b   :  { %v1738_v30 = vadd.f32 %v1659_v13, %v4212_v34  ;;  %v4701_v48 = vsel %vm1721_vm4, %v1737_v20, %v3930_v35  ;;  %vm1730_vm12 = vcmp.gt.f32.partialorder %v3937_v1, 0.0  ;;  %vm1731_vm15 = vcmp.gt.f32.partialorder %v3940_v56, 0.0 }
 0x81c   :  { %v4717_v63 = vsel %vm1724_vm6, %v1740_v7, %v4240_v43 }
 0x81d   :  { %v4706_v59 = vsel %vm1722_vm5, %v1738_v30, %v3931_v37  ;;  %v1860_v4 = vpack.c.bf16 %v4717_v63, %v4722_v3  ;;  %v3938_v30 = vld [vmem:[%s5213_s24 + $0x40] sm:$0xff] }
 0x81e   :  { %v1859_v33 = vpack.c.bf16 %v4706_v59, %v4701_v48  ;;  %vm1729_vm13 = vcmp.gt.f32.partialorder %v3938_v30, 0.0 }
 0x81f   :  { %v3540_v54 = vpop.f32.mrb[48].mxu0 }
 0x820   :  { %v1672_v34 = vpop.f32.mrb[49].mxu0  ;;  %3132 = vmatmul.mubr.msk.bf16.vlgmr.msra.gmra.mrb[60].mxu1 %vm359_vm3, %v1859_v33  ;;  %v1743_v29 = vadd.f32 %v3936_v27, %v3540_v54  ;;  %v3939_v54 = vld [vmem:[%s5213_s24 + $0x58] sm:$0xff] }
 0x821   :  { %v3541_v57 = vpop.f32.mrb[50].mxu0  ;;  %1933 = vmatprep.mubr.bf16.mxu1 %v4008_v2  ;;  %v1741_v43 = vadd.f32 %v3933_v42, %v1672_v34  ;;  %vm1732_vm14 = vcmp.gt.f32.partialorder %v3939_v54, 0.0 }
 0x822   :  { %v1675_v58 = vpop.f32.mrb[51].mxu0  ;;  %v1744_v22 = vadd.f32 %v3935_v16, %v3541_v57  ;;  %v4752_v36 = vsel %vm1727_vm11, %v1743_v29, %v3936_v27 }
 0x823   :  { %v1742_v5 = vadd.f32 %v1675_v58, %v4254_v47  ;;  %v4738_v47 = vsel %vm1725_vm9, %v1741_v43, %v3933_v42  ;;  %vm2810_vm9 = vcmp.gt.f32.partialorder %v4752_v36, 0.0 }
 0x824   :  { %v4750_v32 = vsel %vm1728_vm10, %v1744_v22, %v3935_v16  ;;  %v3944_v16 = vld [vmem:[%s5213_s24 + $0x70] sm:$0xff]  ;;  %vm2808_vm11 = vcmp.gt.f32.partialorder %v4738_v47, 0.0 }
 0x825   :  { %v4736_v14 = vsel %vm1726_vm8, %v1742_v5, %v3934_v12  ;;  %v1862_v20 = vpack.c.bf16 %v4750_v32, %v4752_v36  ;;  %v3941_v5 = vld [vmem:[%s5213_s24 + $0x68] sm:$0xff]  ;;  %v3943_v12 = vld [vmem:[%s5213_s24 + $0x78] sm:$0xff]  ;;  %vm1735_vm7 = vcmp.gt.f32.partialorder %v3944_v16, 0.0  ;;  %vm2805_vm8 = vcmp.gt.f32.partialorder %v4706_v59, 0.0 }
 0x826   :  { %v1861_v15 = vpack.c.bf16 %v4736_v14, %v4738_v47  ;;  %vm1734_vm4 = vcmp.gt.f32.partialorder %v3941_v5, 0.0  ;;  %vm1736_vm6 = vcmp.gt.f32.partialorder %v3943_v12, 0.0  ;;  %vm2811_vm10 = vcmp.gt.f32.partialorder %v4750_v32, 0.0 }
 0x827   :  { %v3544_v6 = vpop.f32.mrb[52].mxu0 }
 0x828   :  { %v1688_v8 = vpop.f32.mrb[53].mxu0  ;;  %3133 = vmatmul.mubr.msk.bf16.gmra.mrb[64].mxu1 %vm359_vm3, %v1860_v4  ;;  %v1747_v57 = vadd.f32 %v3940_v56, %v3544_v6  ;;  %v3942_v6 = vld [vmem:[%s5213_s24 + $0x60] sm:$0xff] }
 0x829   :  { %v3545_v10 = vpop.f32.mrb[54].mxu0  ;;  %1943 = vmatprep.mubr.bf16.mxu1 %v4008_v2  ;;  %v1745_v35 = vadd.f32 %v3938_v30, %v1688_v8  ;;  %vm1733_vm5 = vcmp.gt.f32.partialorder %v3942_v6, 0.0 }
 0x82a   :  { %v1691_v11 = vpop.f32.mrb[55].mxu0  ;;  %v1748_v34 = vadd.f32 %v3939_v54, %v3545_v10  ;;  %v4780_v0 = vsel %vm1731_vm15, %v1747_v57, %v3940_v56 }
 0x82b   :  { %v1746_v13 = vadd.f32 %v3937_v1, %v1691_v11  ;;  %v4766_v33 = vsel %vm1729_vm13, %v1745_v35, %v3938_v30  ;;  %vm2814_vm13 = vcmp.gt.f32.partialorder %v4780_v0, 0.0 }
 0x82c   :  { %v4778_v58 = vsel %vm1732_vm14, %v1748_v34, %v3939_v54  ;;  %vm2812_vm15 = vcmp.gt.f32.partialorder %v4766_v33, 0.0 }
 0x82d   :  { %v4764_v37 = vsel %vm1730_vm12, %v1746_v13, %v3937_v1  ;;  %v1864_v4 = vpack.c.bf16 %v4778_v58, %v4780_v0  ;;  %vm2809_vm12 = vcmp.gt.f32.partialorder %v4736_v14, 0.0  ;;  %vm2815_vm14 = vcmp.gt.f32.partialorder %v4778_v58, 0.0 }
 0x82e   :  { %v1863_v7 = vpack.c.bf16 %v4764_v37, %v4766_v33 }
 0x82f   :  { %v3548_v26 = vpop.f32.mrb[56].mxu0 }
 0x830   :  { %v1704_v23 = vpop.f32.mrb[57].mxu0  ;;  %3134 = vmatmul.mubr.msk.bf16.gmra.mrb[68].mxu1 %vm359_vm3, %v1861_v15  ;;  %v1751_v22 = vadd.f32 %v3944_v16, %v3548_v26 }
 0x831   :  { %v3549_v55 = vpop.f32.mrb[58].mxu0  ;;  %1953 = vmatprep.mubr.bf16.mxu1 %v4008_v2  ;;  %v1749_v42 = vadd.f32 %v3942_v6, %v1704_v23 }
 0x832   :  { %v1707_v28 = vpop.f32.mrb[59].mxu0  ;;  %v1752_v15 = vadd.f32 %v3943_v12, %v3549_v55  ;;  %v4808_v27 = vsel %vm1735_vm7, %v1751_v22, %v3944_v16  ;;  %v3949_v16 = vld [vmem:[%s5197_s7 + $0x20] sm:$0xff]   ;;  %v3950_v22 = vld [vmem:[%s5197_s7 + $0x28] sm:$0xff]  }
 0x833   :  { %v1750_v8 = vadd.f32 %v3941_v5, %v1707_v28  ;;  %v4794_v10 = vsel %vm1733_vm5, %v1749_v42, %v3942_v6  ;;  %vm2818_vm5 = vcmp.gt.f32.partialorder %v4808_v27, 0.0 }
 0x834   :  { %v4806_v23 = vsel %vm1736_vm6, %v1752_v15, %v3943_v12  ;;  %v3946_v12 = vld [vmem:[%s5197_s7 + $0x8] sm:$0xff]   ;;  %v3948_v15 = vld [vmem:[%s5197_s7 + $0x18] sm:$0xff]   ;;  %vm2816_vm7 = vcmp.gt.f32.partialorder %v4794_v10, 0.0 }
 0x835   :  { %v4792_v43 = vsel %vm1734_vm4, %v1750_v8, %v3941_v5  ;;  %v1866_v29 = vpack.c.bf16 %v4806_v23, %v4808_v27  ;;  %vm2813_vm4 = vcmp.gt.f32.partialorder %v4764_v37, 0.0  ;;  %vm2819_vm6 = vcmp.gt.f32.partialorder %v4806_v23, 0.0 }
 0x836   :  { %v1865_v11 = vpack.c.bf16 %v4792_v43, %v4794_v10 }
 0x838   :  { %3135 = vmatmul.mubr.msk.bf16.gmra.mrb[72].mxu1 %vm359_vm3, %v1862_v20 }
 0x839   :  { %1963 = vmatprep.mubr.bf16.mxu1 %v4008_v2 }
 0x840   :  { %3136 = vmatmul.mubr.msk.bf16.gmra.mrb[76].mxu1 %vm359_vm3, %v1863_v7 }
 0x841   :  { %1973 = vmatprep.mubr.bf16.mxu1 %v4008_v2 }
 0x848   :  { %3137 = vmatmul.mubr.msk.bf16.gmra.mrb[80].mxu1 %vm359_vm3, %v1864_v4  ;;  %v3945_v4 = vld [vmem:[%s5197_s7] sm:$0xff]  }
 0x849   :  { %1983 = vmatprep.mubr.bf16.mxu1 %v4008_v2 }
 0x850   :  { %3138 = vmatmul.mubr.msk.bf16.gmra.mrb[84].mxu1 %vm359_vm3, %v1865_v11 }
 0x851   :  { %1993 = vmatprep.mubr.bf16.mxu1 %v4008_v2 }
 0x858   :  { %3139 = vmatmul.mubr.msk.bf16.gmra.mrb[88].mxu1 %vm359_vm3, %v1866_v29  ;;  %v3951_v29 = vld [vmem:[%s5197_s7 + $0x30] sm:$0xff]  }
 0x859   :  { %2131 = vmatprep.mubr.bf16.mxu1 %v4008_v2 }
 0x8cf   :  { %v1807_v55 = vpop.f32.mrb[52].mxu1 }
 0x8d0   :  { %v1809_v28 = vpop.f32.mrb[53].mxu1 }
 0x8d1   :  { %v1811_v20 = vpop.f32.mrb[54].mxu1 }
 0x8d2   :  { %v2095_v1 = vpack.c.bf16 %v1811_v20, %v1807_v55  ;;  %v1813_v13 = vpop.f32.mrb[55].mxu1  ;;  %v3952_v55 = vld [vmem:[%s5197_s7 + $0x38] sm:$0xff]  }
 0x8d3   :  { %v2097_v26 = vpack.c.bf16 %v1813_v13, %v1809_v28 }
 0x8d7   :  { %v4814_v30 = vpop.f32.mrb[56].mxu1 }
 0x8d8   :  { %v1852_v35 = vpop.f32.mrb[57].mxu1 }
 0x8d9   :  { %v4816_v7 = vpop.f32.mrb[58].mxu1  ;;  %v2004_v34 = vmax.f32 %v1852_v35, 0.0 }
 0x8da   :  { %v1856_v54 = vpop.f32.mrb[59].mxu1 }
 0x8db   :  { %v2005_v56 = vmax.f32 %v1856_v54, 0.0 }
 0x8dd   :  { %v2006_v57 = vpack.c.bf16 %v2005_v56, %v2004_v34  ;;  %v3953_v56 = vld [vmem:[%s5193_s3] sm:$0xff]  }
 0x8df   :  { %3567 = vmatmul.mubr.bf16.vlgmr.msra.gmra.mrb[60].mxu0 %v2006_v57 }
 0x8e0   :  { %2053 = vmatpush1.bf16.msra.mxu0 %v4198_v31  ;;  %2084 = vmatprep.mubr.bf16.mxu0 %v4008_v2  ;;  %v3947_v31 = vld [vmem:[%s5197_s7 + $0x10] sm:$0xff]  }
 0x8e1   :  { %3570 = vmatprep.subr.bf16.mxu0 %v3945_v4 }
 0x9b2   :  { %v2041_v5 = vpop.f32.mrb[60].mxu0 }
 0x9b3   :  { %v3568_v8 = vpop.f32.mrb[61].mxu0 }
 0x9b4   :  { %v2044_v6 = vpop.f32.mrb[62].mxu0 }
 0x9b5   :  { %v2048_v42 = vpack.c.bf16 %v2044_v6, %v2041_v5  ;;  %v3569_v11 = vpop.f32.mrb[63].mxu0 }
 0x9b7   :  { %3141 = vmatmul.mubr.msk.bf16.vlgmr.msra.gmra.mrb[64].mxu0 %vm359_vm3, %v2048_v42 }
 0x9b8   :  { %3571 = vmatpush3.bf16.msra.mxu0 %v3945_v4 }
 0x9b9   :  { %3572 = vmatprep.subr.bf16.mxu0 %v3946_v12 }
 0x9bc   :  { %3573 = vmatpush3.bf16.msra.mxu0 %v3946_v12 }
 0x9bd   :  { %3574 = vmatprep.subr.bf16.mxu0 %v3947_v31 }
 0x9c0   :  { %3575 = vmatpush3.bf16.msra.mxu0 %v3947_v31 }
 0x9c1   :  { %3576 = vmatprep.subr.bf16.mxu0 %v3948_v15 }
 0x9c4   :  { %3577 = vmatpush3.bf16.msra.mxu0 %v3948_v15 }
 0x9c5   :  { %3578 = vmatprep.subr.bf16.mxu0 %v3949_v16 }
 0x9c8   :  { %3579 = vmatpush3.bf16.msra.mxu0 %v3949_v16 }
 0x9c9   :  { %3580 = vmatprep.subr.bf16.mxu0 %v3950_v22 }
 0x9cc   :  { %3581 = vmatpush3.bf16.msra.mxu0 %v3950_v22 }
 0x9cd   :  { %3582 = vmatprep.subr.bf16.mxu0 %v3951_v29 }
 0x9d0   :  { %3583 = vmatpush3.bf16.msra.mxu0 %v3951_v29 }
 0x9d1   :  { %3584 = vmatprep.subr.bf16.mxu0 %v3952_v55 }
 0x9d4   :  { %3585 = vmatpush3.bf16.msra.mxu0 %v3952_v55 }
 0x9d5   :  { %3602 = vmatprep.subr.bf16.mxu0 %v4009_v9 }
 0xa8a   :  { %v2086_v28 = vpop.f32.mrb[64].mxu0 }
 0xa8b   :  { %v2088_v20 = vpop.f32.mrb[65].mxu0 }
 0xa8c   :  { %v2090_v13 = vpop.f32.mrb[66].mxu0 }
 0xa8d   :  { %v2096_v35 = vpack.c.bf16 %v2090_v13, %v2086_v28  ;;  %v2092_v54 = vpop.f32.mrb[67].mxu0 }
 0xa8e   :  { %v2098_v34 = vpack.c.bf16 %v2092_v54, %v2088_v20 }
 0xa8f   :  { %2099 = vmatprep.subr.bf16.mxu1 %v2096_v35 }
 0xa90   :  { %2100 = vmatpush1.bf16.msra.mxu1 %v2095_v1  ;;  %v3954_v1 = vld [vmem:[%s5193_s3 + $0x8] sm:$0xff]  }
 0xa91   :  { %2101 = vmatprep.subr.bf16.mxu1 %v2098_v34 }
 0xa94   :  { %2102 = vmatpush1.bf16.msra.mxu1 %v2097_v26 }
 0xa95   :  { %3642 = vmatprep.subr.bf16.mxu1 %v4009_v9 }
 0xa97   :  { %3142 = vmatmul.mubr.msk.bf16.vlgmr.msra.gmra.mrb[60].mxu1 %vm256_vm0, %v3953_v56 }
 0xa98   :  { %2141 = vmatprep.mubr.bf16.mxu1 %v4008_v2  ;;  %3643 = vmatpush3.bf16.msra.mxu1 %v4437_v45  ;;  %v3955_v45 = vld [vmem:[%s5193_s3 + $0x10] sm:$0xff]  }
 0xa99   :  { %3644 = vmatprep.subr.bf16.mxu1 %v4009_v9 }
 0xa9c   :  { %3645 = vmatpush3.bf16.msra.mxu1 %v4443_v46  ;;  %v3956_v46 = vld [vmem:[%s5193_s3 + $0x18] sm:$0xff]  }
 0xa9d   :  { %3646 = vmatprep.subr.bf16.mxu1 %v4009_v9 }
 0xa9f   :  { %3143 = vmatmul.mubr.msk.bf16.gmra.mrb[64].mxu1 %vm256_vm0, %v3954_v1 }
 0xaa0   :  { %2151 = vmatprep.mubr.bf16.mxu1 %v4008_v2  ;;  %3647 = vmatpush3.bf16.msra.mxu1 %v4450_v49  ;;  %v3957_v49 = vld [vmem:[%s5193_s3 + $0x20] sm:$0xff]  }
 0xaa1   :  { %3648 = vmatprep.subr.bf16.mxu1 %v4009_v9 }
 0xaa4   :  { %3649 = vmatpush3.bf16.msra.mxu1 %v4457_v50  ;;  %v3958_v50 = vld [vmem:[%s5193_s3 + $0x28] sm:$0xff]  }
 0xaa5   :  { %3650 = vmatprep.subr.bf16.mxu1 %v4009_v9 }
 0xaa7   :  { %3144 = vmatmul.mubr.msk.bf16.gmra.mrb[68].mxu1 %vm256_vm0, %v3955_v45 }
 0xaa8   :  { %2161 = vmatprep.mubr.bf16.mxu1 %v4008_v2  ;;  %3651 = vmatpush3.bf16.msra.mxu1 %v4464_v51  ;;  %v3959_v51 = vld [vmem:[%s5193_s3 + $0x30] sm:$0xff]  }
 0xaa9   :  { %3652 = vmatprep.subr.bf16.mxu1 %v4009_v9 }
 0xaac   :  { %3653 = vmatpush3.bf16.msra.mxu1 %v4471_v52  ;;  %v3960_v52 = vld [vmem:[%s5193_s3 + $0x38] sm:$0xff]  }
 0xaad   :  { %3654 = vmatprep.subr.bf16.mxu1 %v4009_v9 }
 0xaaf   :  { %3145 = vmatmul.mubr.msk.bf16.gmra.mrb[72].mxu1 %vm256_vm0, %v3956_v46 }
 0xab0   :  { %2171 = vmatprep.mubr.bf16.mxu1 %v4008_v2  ;;  %3655 = vmatpush3.bf16.msra.mxu1 %v4481_v60 }
 0xab1   :  { %3656 = vmatprep.subr.bf16.mxu1 %v4009_v9 }
 0xab4   :  { %3657 = vmatpush3.bf16.msra.mxu1 %v4488_v61 }
 0xab5   :  { %3682 = vmatprep.subr.bf16.mxu1 %v4494_v62 }
 0xab7   :  { %3146 = vmatmul.mubr.msk.bf16.gmra.mrb[76].mxu1 %vm256_vm0, %v3957_v49 }
 0xab8   :  { %2181 = vmatprep.mubr.bf16.mxu1 %v4008_v2 }
 0xabf   :  { %3147 = vmatmul.mubr.msk.bf16.gmra.mrb[80].mxu1 %vm256_vm0, %v3958_v50 }
 0xac0   :  { %2191 = vmatprep.mubr.bf16.mxu1 %v4008_v2 }
 0xac7   :  { %3148 = vmatmul.mubr.msk.bf16.gmra.mrb[84].mxu1 %vm256_vm0, %v3959_v51 }
 0xac8   :  { %2201 = vmatprep.mubr.bf16.mxu1 %v4008_v2 }
 0xacf   :  { %3149 = vmatmul.mubr.msk.bf16.gmra.mrb[88].mxu1 %vm256_vm0, %v3960_v52 }
 0xad0   :  { %3658 = vmatprep.mubr.msk.bf16.mxu1 %vm4010_vm1, %v4009_v9 }
 0xb6a   :  { %v2133_v60 = vpop.f32.mrb[60].mxu1 }
 0xb6b   :  { %v2135_v61 = vpop.f32.mrb[61].mxu1  ;;  %v2228_v26 = vmax.f32 %v2133_v60, 0.0 }
 0xb6c   :  { %v2137_v62 = vpop.f32.mrb[62].mxu1  ;;  %v2560_v5 = vmax.f32 %v2135_v61, 0.0 }
 0xb6d   :  { %v2229_v57 = vmax.f32 %v2137_v62, 0.0  ;;  %v2139_v4 = vpop.f32.mrb[63].mxu1 }
 0xb6e   :  { %v2561_v8 = vmax.f32 %v2139_v4, 0.0 }
 0xb6f   :  { %v2244_v6 = vpack.c.bf16 %v2229_v57, %v2228_v26 }
 0xb70   :  { %v4904_v42 = vpack.c.bf16 %v2561_v8, %v2560_v5 }
 0xb71   :  { %3586 = vmatprep.mubr.bf16.mxu0 %v2244_v6 }
 0xb72   :  { %v2143_v2 = vpop.f32.mrb[64].mxu1 }
 0xb73   :  { %v2145_v11 = vpop.f32.mrb[65].mxu1  ;;  %v2230_v31 = vmax.f32 %v2143_v2, 0.0 }
 0xb74   :  { %v2147_v12 = vpop.f32.mrb[66].mxu1  ;;  %v2562_v22 = vmax.f32 %v2145_v11, 0.0 }
 0xb75   :  { %v2231_v15 = vmax.f32 %v2147_v12, 0.0  ;;  %v2149_v16 = vpop.f32.mrb[67].mxu1 }
 0xb76   :  { %v2563_v29 = vmax.f32 %v2149_v16, 0.0 }
 0xb77   :  { %v2245_v55 = vpack.c.bf16 %v2231_v15, %v2230_v31 }
 0xb78   :  { %v4906_v28 = vpack.c.bf16 %v2563_v29, %v2562_v22 }
 0xb79   :  { %3587 = vmatmul.mubr.bf16.vlgmr.msra.gmra.mrb[68].mxu0 %v2245_v55 }
 0xb7a   :  { %v2153_v20 = vpop.f32.mrb[68].mxu1 }
 0xb7b   :  { %v2155_v13 = vpop.f32.mrb[69].mxu1  ;;  %v2232_v54 = vmax.f32 %v2153_v20, 0.0 }
 0xb7c   :  { %v2157_v35 = vpop.f32.mrb[70].mxu1  ;;  %v2564_v1 = vmax.f32 %v2155_v13, 0.0 }
 0xb7d   :  { %v2233_v34 = vmax.f32 %v2157_v35, 0.0  ;;  %v2159_v56 = vpop.f32.mrb[71].mxu1 }
 0xb7e   :  { %v2565_v45 = vmax.f32 %v2159_v56, 0.0 }
 0xb7f   :  { %v2246_v46 = vpack.c.bf16 %v2233_v34, %v2232_v54 }
 0xb80   :  { %v4908_v49 = vpack.c.bf16 %v2565_v45, %v2564_v1 }
 0xb81   :  { %3590 = vmatprep.mubr.bf16.mxu0 %v2246_v46 }
 0xb82   :  { %v2163_v50 = vpop.f32.mrb[72].mxu1 }
 0xb83   :  { %v2165_v51 = vpop.f32.mrb[73].mxu1  ;;  %v2234_v60 = vmax.f32 %v2163_v50, 0.0 }
 0xb84   :  { %v2167_v52 = vpop.f32.mrb[74].mxu1  ;;  %v2566_v26 = vmax.f32 %v2165_v51, 0.0 }
 0xb85   :  { %v2235_v61 = vmax.f32 %v2167_v52, 0.0  ;;  %v2169_v62 = vpop.f32.mrb[75].mxu1 }
 0xb86   :  { %v2567_v57 = vmax.f32 %v2169_v62, 0.0 }
 0xb87   :  { %v2247_v4 = vpack.c.bf16 %v2235_v61, %v2234_v60 }
 0xb88   :  { %v4910_v5 = vpack.c.bf16 %v2567_v57, %v2566_v26 }
 0xb89   :  { %3591 = vmatmul.mubr.bf16.gmra.mrb[72].mxu0 %v2247_v4 }
 0xb8a   :  { %v2173_v8 = vpop.f32.mrb[76].mxu1 }
 0xb8b   :  { %v2175_v6 = vpop.f32.mrb[77].mxu1  ;;  %v2236_v11 = vmax.f32 %v2173_v8, 0.0 }
 0xb8c   :  { %v2177_v2 = vpop.f32.mrb[78].mxu1  ;;  %v2568_v15 = vmax.f32 %v2175_v6, 0.0 }
 0xb8d   :  { %v2237_v12 = vmax.f32 %v2177_v2, 0.0  ;;  %v2179_v31 = vpop.f32.mrb[79].mxu1 }
 0xb8e   :  { %v2569_v16 = vmax.f32 %v2179_v31, 0.0 }
 0xb8f   :  { %v2248_v22 = vpack.c.bf16 %v2237_v12, %v2236_v11 }
 0xb90   :  { %v4912_v29 = vpack.c.bf16 %v2569_v16, %v2568_v15 }
 0xb91   :  { %3594 = vmatprep.mubr.bf16.mxu0 %v2248_v22 }
 0xb92   :  { %v2183_v55 = vpop.f32.mrb[80].mxu1 }
 0xb93   :  { %v2185_v20 = vpop.f32.mrb[81].mxu1  ;;  %v2238_v35 = vmax.f32 %v2183_v55, 0.0 }
 0xb94   :  { %v2187_v13 = vpop.f32.mrb[82].mxu1  ;;  %v2570_v56 = vmax.f32 %v2185_v20, 0.0 }
 0xb95   :  { %v2239_v54 = vmax.f32 %v2187_v13, 0.0  ;;  %v2189_v34 = vpop.f32.mrb[83].mxu1 }
 0xb96   :  { %v2571_v1 = vmax.f32 %v2189_v34, 0.0 }
 0xb97   :  { %v2249_v45 = vpack.c.bf16 %v2239_v54, %v2238_v35 }
 0xb98   :  { %v4914_v46 = vpack.c.bf16 %v2571_v1, %v2570_v56 }
 0xb99   :  { %3595 = vmatmul.mubr.bf16.gmra.mrb[76].mxu0 %v2249_v45 }
 0xb9a   :  { %v2193_v50 = vpop.f32.mrb[84].mxu1 }
 0xb9b   :  { %v2195_v51 = vpop.f32.mrb[85].mxu1  ;;  %v2240_v60 = vmax.f32 %v2193_v50, 0.0 }
 0xb9c   :  { %v2197_v52 = vpop.f32.mrb[86].mxu1  ;;  %v2572_v26 = vmax.f32 %v2195_v51, 0.0 }
 0xb9d   :  { %v2241_v61 = vmax.f32 %v2197_v52, 0.0  ;;  %v2199_v62 = vpop.f32.mrb[87].mxu1 }
 0xb9e   :  { %v2573_v57 = vmax.f32 %v2199_v62, 0.0 }
 0xb9f   :  { %v2250_v4 = vpack.c.bf16 %v2241_v61, %v2240_v60 }
 0xba0   :  { %v4916_v8 = vpack.c.bf16 %v2573_v57, %v2572_v26 }
 0xba1   :  { %3598 = vmatprep.mubr.bf16.mxu0 %v2250_v4 }
 0xba2   :  { %v2203_v6 = vpop.f32.mrb[88].mxu1 }
 0xba3   :  { %v2205_v2 = vpop.f32.mrb[89].mxu1  ;;  %v2242_v12 = vmax.f32 %v2203_v6, 0.0 }
 0xba4   :  { %v2207_v11 = vpop.f32.mrb[90].mxu1  ;;  %v2574_v16 = vmax.f32 %v2205_v2, 0.0 }
 0xba5   :  { %v2243_v31 = vmax.f32 %v2207_v11, 0.0  ;;  %v2209_v15 = vpop.f32.mrb[91].mxu1 }
 0xba6   :  { %v2575_v22 = vmax.f32 %v2209_v15, 0.0 }
 0xba7   :  { %v2251_v55 = vpack.c.bf16 %v2243_v31, %v2242_v12 }
 0xba8   :  { %v4918_v20 = vpack.c.bf16 %v2575_v22, %v2574_v16 }
 0xba9   :  { %3599 = vmatmul.mubr.bf16.gmra.mrb[80].mxu0 %v2251_v55 }
 0xbaa   :  { %3618 = vmatprep.mubr.msk.bf16.mxu0 %vm4010_vm1, %v4009_v9 }
 0xc4c   :  { %v3588_v13 = vpop.f32.mrb[68].mxu0 }
 0xc4d   :  { %v2286_v35 = vpop.f32.mrb[69].mxu0  ;;  %v2351_v34 = vmax.f32 %v3588_v13, 0.0 }
 0xc4e   :  { %v3589_v54 = vpop.f32.mrb[70].mxu0  ;;  %v2349_v45 = vmax.f32 %v2286_v35, 0.0 }
 0xc4f   :  { %v2352_v56 = vmax.f32 %v3589_v54, 0.0  ;;  %v2289_v1 = vpop.f32.mrb[71].mxu0 }
 0xc50   :  { %v2350_v50 = vmax.f32 %v2289_v1, 0.0 }
 0xc51   :  { %v2366_v51 = vpack.c.bf16 %v2352_v56, %v2351_v34 }
 0xc52   :  { %v2365_v52 = vpack.c.bf16 %v2350_v50, %v2349_v45 }
 0xc54   :  { %3603 = vmatpush3.bf16.msra.mxu0 %v2365_v52 }
 0xc55   :  { %3604 = vmatprep.subr.bf16.mxu0 %v4009_v9 }
 0xc58   :  { %3605 = vmatpush3.bf16.msra.mxu0 %v2366_v51 }
 0xc59   :  { %3606 = vmatprep.subr.bf16.mxu0 %v4009_v9 }
 0xc5c   :  { %v3592_v60 = vpop.f32.mrb[72].mxu0 }
 0xc5d   :  { %v2302_v61 = vpop.f32.mrb[73].mxu0  ;;  %v2355_v26 = vmax.f32 %v3592_v60, 0.0 }
 0xc5e   :  { %v3593_v62 = vpop.f32.mrb[74].mxu0  ;;  %v2353_v6 = vmax.f32 %v2302_v61, 0.0 }
 0xc5f   :  { %v2356_v57 = vmax.f32 %v3593_v62, 0.0  ;;  %v2305_v4 = vpop.f32.mrb[75].mxu0 }
 0xc60   :  { %v2354_v2 = vmax.f32 %v2305_v4, 0.0  ;;  %v3961_v4 = vld [vmem:[%s5192_s2] sm:$0xff]  }
 0xc61   :  { %v2368_v11 = vpack.c.bf16 %v2356_v57, %v2355_v26 }
 0xc62   :  { %v2367_v12 = vpack.c.bf16 %v2354_v2, %v2353_v6  ;;  %v3962_v6 = vld [vmem:[%s5198_s8] sm:$0xff]   ;;  %v3963_v2 = vld [vmem:[%s5198_s8 + $0x8] sm:$0xff]  }
 0xc64   :  { %3607 = vmatpush3.bf16.msra.mxu0 %v2367_v12  ;;  %v3965_v12 = vld [vmem:[%s5198_s8 + $0x18] sm:$0xff]  }
 0xc65   :  { %3608 = vmatprep.subr.bf16.mxu0 %v4009_v9 }
 0xc68   :  { %3609 = vmatpush3.bf16.msra.mxu0 %v2368_v11  ;;  %v3964_v11 = vld [vmem:[%s5198_s8 + $0x10] sm:$0xff]  }
 0xc69   :  { %3610 = vmatprep.subr.bf16.mxu0 %v4009_v9 }
 0xc6c   :  { %v3596_v31 = vpop.f32.mrb[76].mxu0 }
 0xc6d   :  { %v2318_v15 = vpop.f32.mrb[77].mxu0  ;;  %v2359_v22 = vmax.f32 %v3596_v31, 0.0  ;;  %v3966_v31 = vld [vmem:[%s5198_s8 + $0x20] sm:$0xff]  }
 0xc6e   :  { %v3597_v16 = vpop.f32.mrb[78].mxu0  ;;  %v2357_v35 = vmax.f32 %v2318_v15, 0.0  ;;  %v3967_v15 = vld [vmem:[%s5198_s8 + $0x28] sm:$0xff]  }
 0xc6f   :  { %v2360_v55 = vmax.f32 %v3597_v16, 0.0  ;;  %v2321_v13 = vpop.f32.mrb[79].mxu0  ;;  %v3968_v16 = vld [vmem:[%s5198_s8 + $0x30] sm:$0xff]  }
 0xc70   :  { %v2358_v54 = vmax.f32 %v2321_v13, 0.0 }
 0xc71   :  { %v2370_v34 = vpack.c.bf16 %v2360_v55, %v2359_v22  ;;  %v3969_v22 = vld [vmem:[%s5198_s8 + $0x38] sm:$0xff]  }
 0xc72   :  { %v2369_v56 = vpack.c.bf16 %v2358_v54, %v2357_v35 }
 0xc74   :  { %3611 = vmatpush3.bf16.msra.mxu0 %v2369_v56  ;;  %v3970_v56 = vld [vmem:[%s5200_s10] sm:$0xff]  }
 0xc75   :  { %3612 = vmatprep.subr.bf16.mxu0 %v4009_v9 }
 0xc78   :  { %3613 = vmatpush3.bf16.msra.mxu0 %v2370_v34 }
 0xc79   :  { %3614 = vmatprep.subr.bf16.mxu0 %v4009_v9 }
 0xc7c   :  { %v3600_v1 = vpop.f32.mrb[80].mxu0 }
 0xc7d   :  { %v2334_v45 = vpop.f32.mrb[81].mxu0  ;;  %v2363_v51 = vmax.f32 %v3600_v1, 0.0  ;;  %v3971_v1 = vld [vmem:[%s5200_s10 + $0x8] sm:$0xff]  }
 0xc7e   :  { %v3601_v50 = vpop.f32.mrb[82].mxu0  ;;  %v2361_v61 = vmax.f32 %v2334_v45, 0.0  ;;  %v3972_v45 = vld [vmem:[%s5200_s10 + $0x10] sm:$0xff]  }
 0xc7f   :  { %v2364_v52 = vmax.f32 %v3601_v50, 0.0  ;;  %v2337_v60 = vpop.f32.mrb[83].mxu0  ;;  %v3973_v50 = vld [vmem:[%s5200_s10 + $0x18] sm:$0xff]  }
 0xc80   :  { %v2362_v62 = vmax.f32 %v2337_v60, 0.0 }
 0xc81   :  { %v2372_v26 = vpack.c.bf16 %v2364_v52, %v2363_v51  ;;  %v3974_v51 = vld [vmem:[%s5200_s10 + $0x20] sm:$0xff]   ;;  %v3975_v52 = vld [vmem:[%s5200_s10 + $0x28] sm:$0xff]  }
 0xc82   :  { %v2371_v57 = vpack.c.bf16 %v2362_v62, %v2361_v61 }
 0xc84   :  { %3615 = vmatpush3.bf16.msra.mxu0 %v2371_v57 }
 0xc85   :  { %3616 = vmatprep.subr.bf16.mxu0 %v4009_v9 }
 0xc88   :  { %3617 = vmatpush3.bf16.msra.mxu0 %v2372_v26 }
 0xc89   :  { %3622 = vmatprep.subr.bf16.mxu0 %v4009_v9 }
 0xc8b   :  { %3619 = vmatmul.mubr.bf16.vlgmr.msra.gmra.mrb[84].mxu0 %v3961_v4 }
 0xc8c   :  { %3623 = vmatpush3.bf16.msra.mxu0 %v3962_v6  ;;  %3638 = vmatprep.mubr.msk.bf16.mxu0 %vm4010_vm1, %v4009_v9 }
 0xc8d   :  { %3624 = vmatprep.subr.bf16.mxu0 %v4009_v9 }
 0xc90   :  { %3625 = vmatpush3.bf16.msra.mxu0 %v3963_v2 }
 0xc91   :  { %3626 = vmatprep.subr.bf16.mxu0 %v4009_v9 }
 0xc94   :  { %3627 = vmatpush3.bf16.msra.mxu0 %v3964_v11 }
 0xc95   :  { %3628 = vmatprep.subr.bf16.mxu0 %v4009_v9 }
 0xc98   :  { %3629 = vmatpush3.bf16.msra.mxu0 %v3965_v12  ;;  %v3982_v12 = vld [vmem:[%s5202_s12 + $0x30] sm:$0xff]  }
 0xc99   :  { %3630 = vmatprep.subr.bf16.mxu0 %v4009_v9 }
 0xc9c   :  { %3631 = vmatpush3.bf16.msra.mxu0 %v3966_v31  ;;  %v3983_v31 = vld [vmem:[%s5202_s12 + $0x38] sm:$0xff]  }
 0xc9d   :  { %3632 = vmatprep.subr.bf16.mxu0 %v4009_v9 }
 0xca0   :  { %3633 = vmatpush3.bf16.msra.mxu0 %v3967_v15 }
 0xca1   :  { %3634 = vmatprep.subr.bf16.mxu0 %v4009_v9 }
 0xca4   :  { %3635 = vmatpush3.bf16.msra.mxu0 %v3968_v16 }
 0xca5   :  { %3636 = vmatprep.subr.bf16.mxu0 %v4009_v9 }
 0xca8   :  { %3637 = vmatpush3.bf16.msra.mxu0 %v3969_v22 }
 0xca9   :  { %3662 = vmatprep.subr.bf16.mxu0 %v4009_v9 }
 0xd5e   :  { %v2407_v55 = vpop.f32.mrb[84].mxu0 }
 0xd5f   :  { %v3620_v13 = vpop.f32.mrb[85].mxu0 }
 0xd60   :  { %v2410_v35 = vpop.f32.mrb[86].mxu0 }
 0xd61   :  { %v2414_v54 = vpack.c.bf16 %v2410_v35, %v2407_v55  ;;  %v3621_v34 = vpop.f32.mrb[87].mxu0 }
 0xd63   :  { %3639 = vmatmul.mubr.bf16.vlgmr.msra.gmra.mrb[88].mxu0 %v2414_v54 }
 0xd64   :  { %3663 = vmatpush3.bf16.msra.mxu0 %v3970_v56  ;;  %3678 = vmatprep.mubr.msk.bf16.mxu0 %vm4010_vm1, %v4009_v9  ;;  %vm2806_vm1 = vcmp.gt.f32.partialorder %v4722_v3, 0.0 }
 0xd65   :  { %3664 = vmatprep.subr.bf16.mxu0 %v4009_v9 }
 0xd68   :  { %3665 = vmatpush3.bf16.msra.mxu0 %v3971_v1 }
 0xd69   :  { %3666 = vmatprep.subr.bf16.mxu0 %v4009_v9 }
 0xd6c   :  { %3667 = vmatpush3.bf16.msra.mxu0 %v3972_v45 }
 0xd6d   :  { %3668 = vmatprep.subr.bf16.mxu0 %v4009_v9 }
 0xd70   :  { %3669 = vmatpush3.bf16.msra.mxu0 %v3973_v50 }
 0xd71   :  { %3670 = vmatprep.subr.bf16.mxu0 %v4009_v9 }
 0xd74   :  { %3671 = vmatpush3.bf16.msra.mxu0 %v3974_v51 }
 0xd75   :  { %3672 = vmatprep.subr.bf16.mxu0 %v4009_v9 }
 0xd78   :  { %3673 = vmatpush3.bf16.msra.mxu0 %v3975_v52 }
 0xd79   :  { %3674 = vmatprep.subr.bf16.mxu0 %v4009_v9 }
 0xd7c   :  { %3675 = vmatpush3.bf16.msra.mxu0 %v4564_v17  ;;  %v3977_v17 = vld [vmem:[%s5202_s12 + $0x8] sm:$0xff]  }
 0xd7d   :  { %3676 = vmatprep.subr.bf16.mxu0 %v4009_v9  ;;  %v3976_v9 = vld [vmem:[%s5202_s12] sm:$0xff]  }
 0xd80   :  { %3677 = vmatpush3.bf16.msra.mxu0 %v4571_v18  ;;  %v3978_v18 = vld [vmem:[%s5202_s12 + $0x10] sm:$0xff]  }
 0xd81   :  { %3714 = vmatprep.subr.bf16.mxu0 %v4577_v19 }
 0xe36   :  { %v2449_v60 = vpop.f32.mrb[88].mxu0 }
 0xe37   :  { %v2450_v61 = vadd.f32 %v2449_v60, %v4814_v30  ;;  %v3640_v62 = vpop.f32.mrb[89].mxu0  ;;  %v3979_v30 = vld [vmem:[%s5202_s12 + $0x18] sm:$0xff]  }
 0xe38   :  { %v2452_v26 = vpop.f32.mrb[90].mxu0 }
 0xe39   :  { %v2453_v57 = vadd.f32 %v2452_v26, %v4816_v7  ;;  %v3641_v4 = vpop.f32.mrb[91].mxu0  ;;  %v2456_v6 = vmax.f32 %v2450_v61, 0.0  ;;  %v3980_v7 = vld [vmem:[%s5202_s12 + $0x20] sm:$0xff]  }
 0xe3b   :  { %v2457_v2 = vmax.f32 %v2453_v57, 0.0 }
 0xe3d   :  { %v2458_v11 = vpack.c.bf16 %v2457_v2, %v2456_v6 }
 0xe3f   :  { %3659 = vmatmul.mubr.bf16.vlgmr.msra.gmra.mrb[92].mxu1 %v2458_v11 }
 0xe40   :  { %3683 = vmatpush3.bf16.msra.mxu1 %v3976_v9  ;;  %3698 = vmatprep.mubr.bf16.mxu1 %v4904_v42  ;;  %v3981_v42 = vld [vmem:[%s5202_s12 + $0x28] sm:$0xff]  }
 0xe41   :  { %3684 = vmatprep.subr.bf16.mxu1 %v3977_v17 }
 0xe44   :  { %3685 = vmatpush3.bf16.msra.mxu1 %v3977_v17 }
 0xe45   :  { %3686 = vmatprep.subr.bf16.mxu1 %v3978_v18 }
 0xe48   :  { %3687 = vmatpush3.bf16.msra.mxu1 %v3978_v18 }
 0xe49   :  { %3688 = vmatprep.subr.bf16.mxu1 %v3979_v30 }
 0xe4c   :  { %3689 = vmatpush3.bf16.msra.mxu1 %v3979_v30 }
 0xe4d   :  { %3690 = vmatprep.subr.bf16.mxu1 %v3980_v7 }
 0xe50   :  { %3691 = vmatpush3.bf16.msra.mxu1 %v3980_v7 }
 0xe51   :  { %3692 = vmatprep.subr.bf16.mxu1 %v3981_v42 }
 0xe54   :  { %3693 = vmatpush3.bf16.msra.mxu1 %v3981_v42 }
 0xe55   :  { %3694 = vmatprep.subr.bf16.mxu1 %v3982_v12 }
 0xe58   :  { %3695 = vmatpush3.bf16.msra.mxu1 %v3982_v12 }
 0xe59   :  { %3696 = vmatprep.subr.bf16.mxu1 %v3983_v31 }
 0xe5c   :  { %3697 = vmatpush3.bf16.msra.mxu1 %v3983_v31 }
 0xe5f   :  { %3699 = vmatmul.mubr.bf16.vlgmr.msra.gmra.mrb[96].mxu1 %v4906_v28 }
 0xe60   :  { %3702 = vmatprep.mubr.bf16.mxu1 %v4908_v49 }
 0xe67   :  { %3703 = vmatmul.mubr.bf16.gmra.mrb[100].mxu1 %v4910_v5 }
 0xe68   :  { %3706 = vmatprep.mubr.bf16.mxu1 %v4912_v29 }
 0xe6f   :  { %3707 = vmatmul.mubr.bf16.gmra.mrb[104].mxu1 %v4914_v46 }
 0xe70   :  { %3710 = vmatprep.mubr.bf16.mxu1 %v4916_v8 }
 0xe77   :  { %3711 = vmatmul.mubr.bf16.gmra.mrb[108].mxu1 %v4918_v20 }
 0xf12   :  { %v2493_v15 = vpop.f32.mrb[92].mxu1 }
 0xf13   :  { %v3660_v16 = vpop.f32.mrb[93].mxu1  ;;  %v2500_v55 = vmax.f32 %v2493_v15, 0.0 }
 0xf14   :  { %v2496_v22 = vpop.f32.mrb[94].mxu1  ;;  %v2854_v16 = vld [vmem:[%s5204_s14] sm:$0xf]  ;;  %s4011_s14 = smov [#allocation2]  }
 0xf15   :  { %v2501_v13 = vmax.f32 %v2496_v22, 0.0  ;;  %v3661_v35 = vpop.f32.mrb[95].mxu1  ;;  %3828 = vmatprep.subr.msk.bf16.mxu1 %vm384_vm2, %v2854_v16  ;;  %v2895_v22 = vsel %vm384_vm2, %v2854_v16, 0  ;;  %vm2807_vm2 = vcmp.gt.f32.partialorder %v4717_v63, 0.0  ;;  %s3016_s19 = sshll.u32 %s4011_s14, 4  ;;  %s3017_s19 = int_to_ptr.vmem [resolvable:$true] %s3016_s19 }
 0xf16   :  { %3747 = vmatpush3.bf16.msra.mxu1 %v2895_v22  ;;  %s3984_s20 = scalar_lea.vmem %s3017_s19, 256  ;;  %p3989_p1 = scmp.lt.s32.totalorder %s3017_s19, %s3017_s19 }
 0xf17   :  { %v2502_v54 = vpack.c.bf16 %v2501_v13, %v2500_v55  ;;  %p3985_p0 = scmp.ne.s32.totalorder %s3017_s19, %s3984_s20  ;;  %p3990_p2 = scmp.lt.s32.totalorder %s3984_s20, %s3984_s20 }
 0xf19   :  { %3679 = vmatmul.mubr.bf16.vlgmr.msra.gmra.mrb[92].mxu0 %v2502_v54  ;;  %p3991_p3 = por %p3990_p2, %p3989_p1 }
 0xf1a   :  { %3715 = vmatpush3.bf16.msra.mxu0 %v4577_v19 }
 0xf1b   :  { %3716 = vmatprep.subr.bf16.mxu0 %v4583_v25  ;;  %p3992_p4 = pnand %p3991_p3, %p3985_p0 }
 0xf1e   :  { %3717 = vmatpush3.bf16.msra.mxu0 %v4583_v25 }
 0xf1f   :  { %3718 = vmatprep.subr.bf16.mxu0 %v4590_v38 }
 0xf22   :  { %3719 = vmatpush3.bf16.msra.mxu0 %v4590_v38 }
 0xf23   :  { %3720 = vmatprep.subr.bf16.mxu0 %v4597_v39 }
 0xf26   :  { %3721 = vmatpush3.bf16.msra.mxu0 %v4597_v39 }
 0xf27   :  { %3722 = vmatprep.subr.bf16.mxu0 %v4604_v40 }
 0xf2a   :  { %3723 = vmatpush3.bf16.msra.mxu0 %v4604_v40 }
 0xf2b   :  { %3724 = vmatprep.subr.bf16.mxu0 %v4611_v41 }
 0xf2e   :  { %3725 = vmatpush3.bf16.msra.mxu0 %v4611_v41 }
 0xf2f   :  { %3726 = vmatprep.subr.bf16.mxu0 %v4618_v44 }
 0xf32   :  { %v3700_v19 = vpop.f32.mrb[96].mxu1  ;;  %3727 = vmatpush3.bf16.msra.mxu0 %v4618_v44 }
 0xf33   :  { %v2618_v25 = vpop.f32.mrb[97].mxu1  ;;  %3728 = vmatprep.subr.bf16.mxu0 %v4625_v53  ;;  %v2683_v28 = vmax.f32 %v3700_v19, 0.0 }
 0xf34   :  { %v3701_v38 = vpop.f32.mrb[98].mxu1  ;;  %v2681_v5 = vmax.f32 %v2618_v25, 0.0 }
 0xf35   :  { %v2684_v49 = vmax.f32 %v3701_v38, 0.0  ;;  %v2621_v39 = vpop.f32.mrb[99].mxu1 }
 0xf36   :  { %v2682_v29 = vmax.f32 %v2621_v39, 0.0  ;;  %3729 = vmatpush3.bf16.msra.mxu0 %v4625_v53 }
 0xf37   :  { %v2698_v40 = vpack.c.bf16 %v2684_v49, %v2683_v28 }
 0xf38   :  { %v2697_v46 = vpack.c.bf16 %v2682_v29, %v2681_v5 }
 0xf3a   :  { %v3704_v8 = vpop.f32.mrb[100].mxu1  ;;  %3730 = vmatprep.mubr.bf16.mxu0 %v2697_v46 }
 0xf3b   :  { %v2634_v41 = vpop.f32.mrb[101].mxu1  ;;  %3731 = vmatmul.mubr.bf16.vlgmr.msra.gmra.mrb[96].mxu0 %v2698_v40  ;;  %v2687_v34 = vmax.f32 %v3704_v8, 0.0 }
 0xf3c   :  { %v3705_v20 = vpop.f32.mrb[102].mxu1  ;;  %v2685_v1 = vmax.f32 %v2634_v41, 0.0 }
 0xf3d   :  { %v2688_v44 = vmax.f32 %v3705_v20, 0.0  ;;  %v2637_v56 = vpop.f32.mrb[103].mxu1 }
 0xf3e   :  { %v2686_v45 = vmax.f32 %v2637_v56, 0.0 }
 0xf3f   :  { %v2700_v50 = vpack.c.bf16 %v2688_v44, %v2687_v34 }
 0xf40   :  { %v2699_v51 = vpack.c.bf16 %v2686_v45, %v2685_v1 }
 0xf42   :  { %v3708_v52 = vpop.f32.mrb[104].mxu1  ;;  %3734 = vmatprep.mubr.bf16.mxu0 %v2699_v51 }
 0xf43   :  { %v2650_v60 = vpop.f32.mrb[105].mxu1  ;;  %3735 = vmatmul.mubr.bf16.gmra.mrb[100].mxu0 %v2700_v50  ;;  %v2691_v53 = vmax.f32 %v3708_v52, 0.0 }
 0xf44   :  { %v3709_v61 = vpop.f32.mrb[106].mxu1  ;;  %v2689_v57 = vmax.f32 %v2650_v60, 0.0 }
 0xf45   :  { %v2692_v62 = vmax.f32 %v3709_v61, 0.0  ;;  %v2653_v26 = vpop.f32.mrb[107].mxu1 }
 0xf46   :  { %v2690_v4 = vmax.f32 %v2653_v26, 0.0 }
 0xf47   :  { %v2702_v6 = vpack.c.bf16 %v2692_v62, %v2691_v53 }
 0xf48   :  { %v2701_v2 = vpack.c.bf16 %v2690_v4, %v2689_v57 }
 0xf4a   :  { %v3712_v11 = vpop.f32.mrb[108].mxu1  ;;  %3738 = vmatprep.mubr.bf16.mxu0 %v2701_v2 }
 0xf4b   :  { %v2666_v9 = vpop.f32.mrb[109].mxu1  ;;  %3739 = vmatmul.mubr.bf16.gmra.mrb[104].mxu0 %v2702_v6  ;;  %v2695_v18 = vmax.f32 %v3712_v11, 0.0 }
 0xf4c   :  { %v3713_v17 = vpop.f32.mrb[110].mxu1  ;;  %v2693_v42 = vmax.f32 %v2666_v9, 0.0 }
 0xf4d   :  { %v2696_v30 = vmax.f32 %v3713_v17, 0.0  ;;  %v2669_v7 = vpop.f32.mrb[111].mxu1 }
 0xf4e   :  { %v2694_v12 = vmax.f32 %v2669_v7, 0.0 }
 0xf4f   :  { %v2704_v31 = vpack.c.bf16 %v2696_v30, %v2695_v18 }
 0xf50   :  { %v2703_v15 = vpack.c.bf16 %v2694_v12, %v2693_v42 }
 0xf52   :  { %3742 = vmatprep.mubr.bf16.mxu0 %v2703_v15 }
 0xf53   :  { %3743 = vmatmul.mubr.bf16.gmra.mrb[108].mxu0 %v2704_v31 }
 0xfec   :  { %v2537_v55 = vpop.f32.mrb[92].mxu0 }
 0xfed   :  { %v2802_v13 = vadd.f32 %v2537_v55, %v4669_v24  ;;  %v3680_v35 = vpop.f32.mrb[93].mxu0 }
 0xfee   :  { %v2540_v54 = vpop.f32.mrb[94].mxu0 }
 0xfef   :  { %2852 = vst.msk [vmem:[#allocation2] sm:$0xff] %vm256_vm0, %v2802_v13  ;;  %v2803_v19 = vadd.f32 %v2540_v54, %v4674_v21  ;;  %v3681_v25 = vpop.f32.mrb[95].mxu0 }
 0xff1   :  { %2853 = vst.msk [vmem:[#allocation2 + $0x8] sm:$0xff] %vm256_vm0, %v2803_v19  ;;  %vm2804_vm0 = vcmp.gt.f32.partialorder %v4701_v48, 0.0 }
0x100e   :  { %v3732_v38 = vpop.f32.mrb[96].mxu0 }
0x100f   :  { %v2822_v28 = vadd.f32 %v3732_v38, %v4722_v3  ;;  %v2739_v49 = vpop.f32.mrb[97].mxu0 }
0x1010   :  { %v2820_v39 = vadd.f32 %v2739_v49, %v4701_v48  ;;  %v3733_v5 = vpop.f32.mrb[98].mxu0 }
0x1011   :  { %v2823_v29 = vadd.f32 %v3733_v5, %v4717_v63  ;;  %v2742_v40 = vpop.f32.mrb[99].mxu0  ;;  %v2838_v21 = vsel %vm2806_vm1, %v2822_v28, %v4722_v3  ;;  %vm2817_vm1 = vcmp.gt.f32.partialorder %v4792_v43, 0.0 }
0x1012   :  { %v2821_v24 = vadd.f32 %v2742_v40, %v4706_v59  ;;  %v2836_v8 = vsel %vm2804_vm0, %v2820_v39, %v4701_v48 }
0x1013   :  { %v2839_v46 = vsel %vm2807_vm2, %v2823_v29, %v4717_v63 }
0x1014   :  { %v2856_v41 = vpack.c.bf16 %v2839_v46, %v2838_v21  ;;  %v2837_v20 = vsel %vm2805_vm8, %v2821_v24, %v4706_v59 }
0x1015   :  { %v2855_v34 = vpack.c.bf16 %v2837_v20, %v2836_v8 }
0x1016   :  { %v3736_v44 = vpop.f32.mrb[100].mxu0 }
0x1017   :  { %v2826_v56 = vadd.f32 %v3736_v44, %v4752_v36  ;;  %v2755_v1 = vpop.f32.mrb[101].mxu0  ;;  %3748 = vmatprep.mubr.msk.bf16.mxu1 %vm359_vm3, %v2855_v34 }
0x1018   :  { %v2824_v3 = vadd.f32 %v2755_v1, %v4738_v47  ;;  %v3737_v45 = vpop.f32.mrb[102].mxu0  ;;  %3749 = vmatmul.mubr.msk.bf16.vlgmr.msra.gmra.mrb[112].mxu1 %vm359_vm3, %v2856_v41 }
0x1019   :  { %v2827_v63 = vadd.f32 %v3737_v45, %v4750_v32  ;;  %v2758_v50 = vpop.f32.mrb[103].mxu0  ;;  %v2842_v59 = vsel %vm2810_vm9, %v2826_v56, %v4752_v36 }
0x101a   :  { %v2825_v48 = vadd.f32 %v2758_v50, %v4736_v14  ;;  %v2840_v52 = vsel %vm2808_vm11, %v2824_v3, %v4738_v47 }
0x101b   :  { %v2843_v51 = vsel %vm2811_vm10, %v2827_v63, %v4750_v32 }
0x101c   :  { %v2858_v60 = vpack.c.bf16 %v2843_v51, %v2842_v59  ;;  %v2841_v61 = vsel %vm2809_vm12, %v2825_v48, %v4736_v14 }
0x101d   :  { %v2857_v53 = vpack.c.bf16 %v2841_v61, %v2840_v52 }
0x101e   :  { %v3740_v62 = vpop.f32.mrb[104].mxu0 }
0x101f   :  { %v2830_v26 = vadd.f32 %v3740_v62, %v4780_v0  ;;  %v2771_v57 = vpop.f32.mrb[105].mxu0  ;;  %3752 = vmatprep.mubr.msk.bf16.mxu1 %vm359_vm3, %v2857_v53 }
0x1020   :  { %v2828_v36 = vadd.f32 %v2771_v57, %v4766_v33  ;;  %v3741_v4 = vpop.f32.mrb[106].mxu0  ;;  %3753 = vmatmul.mubr.msk.bf16.gmra.mrb[116].mxu1 %vm359_vm3, %v2858_v60 }
0x1021   :  { %v2831_v32 = vadd.f32 %v3741_v4, %v4778_v58  ;;  %v2774_v6 = vpop.f32.mrb[107].mxu0  ;;  %v2846_v47 = vsel %vm2814_vm13, %v2830_v26, %v4780_v0 }
0x1022   :  { %v2829_v14 = vadd.f32 %v2774_v6, %v4764_v37  ;;  %v2844_v11 = vsel %vm2812_vm15, %v2828_v36, %v4766_v33 }
0x1023   :  { %v2847_v2 = vsel %vm2815_vm14, %v2831_v32, %v4778_v58 }
0x1024   :  { %v2860_v9 = vpack.c.bf16 %v2847_v2, %v2846_v47  ;;  %v2845_v17 = vsel %vm2813_vm4, %v2829_v14, %v4764_v37 }
0x1025   :  { %v2859_v18 = vpack.c.bf16 %v2845_v17, %v2844_v11 }
0x1026   :  { %v3744_v30 = vpop.f32.mrb[108].mxu0 }
0x1027   :  { %v2834_v7 = vadd.f32 %v3744_v30, %v4808_v27  ;;  %v2787_v42 = vpop.f32.mrb[109].mxu0  ;;  %3756 = vmatprep.mubr.msk.bf16.mxu1 %vm359_vm3, %v2859_v18 }
0x1028   :  { %v2832_v0 = vadd.f32 %v2787_v42, %v4794_v10  ;;  %v3745_v12 = vpop.f32.mrb[110].mxu0  ;;  %3757 = vmatmul.mubr.msk.bf16.gmra.mrb[120].mxu1 %vm359_vm3, %v2860_v9 }
0x1029   :  { %v2835_v58 = vadd.f32 %v3745_v12, %v4806_v23  ;;  %v2790_v31 = vpop.f32.mrb[111].mxu0  ;;  %v2850_v33 = vsel %vm2818_vm5, %v2834_v7, %v4808_v27 }
0x102a   :  { %v2833_v37 = vadd.f32 %v2790_v31, %v4792_v43  ;;  %v2848_v16 = vsel %vm2816_vm7, %v2832_v0, %v4794_v10 }
0x102b   :  { %v2851_v15 = vsel %vm2819_vm6, %v2835_v58, %v4806_v23 }
0x102c   :  { %v2862_v22 = vpack.c.bf16 %v2851_v15, %v2850_v33  ;;  %v2849_v55 = vsel %vm2817_vm1, %v2833_v37, %v4792_v43 }
0x102d   :  { %v2861_v13 = vpack.c.bf16 %v2849_v55, %v2848_v16 }
0x102f   :  { %3760 = vmatprep.mubr.msk.bf16.mxu1 %vm359_vm3, %v2861_v13 }
0x1030   :  { %3761 = vmatmul.mubr.msk.bf16.gmra.mrb[124].mxu1 %vm359_vm3, %v2862_v22 }
0x1031   :  { %3995 = shalt.err (!%p3992_p4)
}
0x1032   :  { %s3996_s3 = scalar_lea.hbm %s5206_s16, 256 }
0x1033   :  { %p3997_p5 = scmp.ne.s32.totalorder %s5206_s16, %s3996_s3  ;;  %p4000_p6 = scmp.lt.u32.totalorder %s3996_s3, %s5206_s16 }
0x1035   :  { %p4002_p7 = pnand %p4000_p6, %p3997_p5 }
0x1037   :  { %4005 = shalt.err (!%p4002_p7)
}
0x1038   :  { %s4012_s10 = smov 128   ;;  %s4013_s11 = smov 8   ;;  %v3150_v43 = vld [vmem:[%s5205_s15] ss:$0 sm:$0xff]  ;;  %vm2994_vm3 = vcmask 31744  }
0x1039   :  { %3022 = dma.vmem_to_hbm [thread:$0]  %s3017_s19, 256, %s5206_s16, [#allocation3], %s4012_s10, %s4012_s10, %s4013_s11  }
0x10eb   :  { %v3750_v10 = vpop.f32.mrb[112].mxu1 }
0x10ec   :  { %v2940_v23 = vadd.f32 %v3750_v10, %v3150_v43  ;;  %v2931_v27 = vpop.f32.mrb[113].mxu1 }
0x10ed   :  { %v2932_v35 = vadd.f32 %v3150_v43, %v2931_v27  ;;  %v3751_v54 = vpop.f32.mrb[114].mxu1 }
0x10ee   :  { %2997 = vst.msk [vmem:[%s5207_s17 + $0x10] sm:$0xff] %vm2994_vm3, %v2940_v23  ;;  %v2943_v19 = vadd.f32 %v3751_v54, %v3150_v43  ;;  %v2934_v25 = vpop.f32.mrb[115].mxu1 }
0x10ef   :  { %2995 = vst.msk [vmem:[%s5207_s17] sm:$0xff] %vm2994_vm3, %v2932_v35  ;;  %v2935_v38 = vadd.f32 %v3150_v43, %v2934_v25 }
0x10f0   :  { %2998 = vst.msk [vmem:[%s5207_s17 + $0x18] sm:$0xff] %vm2994_vm3, %v2943_v19 }
0x10f1   :  { %2996 = vst.msk [vmem:[%s5207_s17 + $0x8] sm:$0xff] %vm2994_vm3, %v2935_v38 }
0x10f3   :  { %v3754_v28 = vpop.f32.mrb[116].mxu1 }
0x10f4   :  { %v2956_v49 = vadd.f32 %v3754_v28, %v3150_v43  ;;  %v2947_v39 = vpop.f32.mrb[117].mxu1 }
0x10f5   :  { %v2948_v5 = vadd.f32 %v3150_v43, %v2947_v39  ;;  %v3755_v29 = vpop.f32.mrb[118].mxu1 }
0x10f6   :  { %3001 = vst.msk [vmem:[%s5207_s17 + $0x30] sm:$0xff] %vm2994_vm3, %v2956_v49  ;;  %v2959_v40 = vadd.f32 %v3755_v29, %v3150_v43  ;;  %v2950_v24 = vpop.f32.mrb[119].mxu1 }
0x10f7   :  { %2999 = vst.msk [vmem:[%s5207_s17 + $0x20] sm:$0xff] %vm2994_vm3, %v2948_v5  ;;  %v2951_v21 = vadd.f32 %v3150_v43, %v2950_v24 }
0x10f8   :  { %3002 = vst.msk [vmem:[%s5207_s17 + $0x38] sm:$0xff] %vm2994_vm3, %v2959_v40 }
0x10f9   :  { %3000 = vst.msk [vmem:[%s5207_s17 + $0x28] sm:$0xff] %vm2994_vm3, %v2951_v21 }
0x10fb   :  { %v3758_v46 = vpop.f32.mrb[120].mxu1 }
0x10fc   :  { %v2972_v8 = vadd.f32 %v3758_v46, %v3150_v43  ;;  %v2963_v41 = vpop.f32.mrb[121].mxu1 }
0x10fd   :  { %v2964_v20 = vadd.f32 %v3150_v43, %v2963_v41  ;;  %v3759_v34 = vpop.f32.mrb[122].mxu1 }
0x10fe   :  { %3005 = vst.msk [vmem:[%s5207_s17 + $0x50] sm:$0xff] %vm2994_vm3, %v2972_v8  ;;  %v2975_v44 = vadd.f32 %v3759_v34, %v3150_v43  ;;  %v2966_v56 = vpop.f32.mrb[123].mxu1 }
0x10ff   :  { %3003 = vst.msk [vmem:[%s5207_s17 + $0x40] sm:$0xff] %vm2994_vm3, %v2964_v20  ;;  %v2967_v1 = vadd.f32 %v3150_v43, %v2966_v56 }
0x1100   :  { %3006 = vst.msk [vmem:[%s5207_s17 + $0x58] sm:$0xff] %vm2994_vm3, %v2975_v44 }
0x1101   :  { %3004 = vst.msk [vmem:[%s5207_s17 + $0x48] sm:$0xff] %vm2994_vm3, %v2967_v1 }
0x1103   :  { %v3762_v3 = vpop.f32.mrb[124].mxu1 }
0x1104   :  { %v2988_v45 = vadd.f32 %v3762_v3, %v3150_v43  ;;  %v2979_v63 = vpop.f32.mrb[125].mxu1 }
0x1105   :  { %v2980_v50 = vadd.f32 %v3150_v43, %v2979_v63  ;;  %v3763_v48 = vpop.f32.mrb[126].mxu1 }
0x1106   :  { %3009 = vst.msk [vmem:[%s5207_s17 + $0x70] sm:$0xff] %vm2994_vm3, %v2988_v45  ;;  %v2991_v59 = vadd.f32 %v3763_v48, %v3150_v43  ;;  %v2982_v51 = vpop.f32.mrb[127].mxu1 }
0x1107   :  { %3007 = vst.msk [vmem:[%s5207_s17 + $0x60] sm:$0xff] %vm2994_vm3, %v2980_v50  ;;  %v2983_v52 = vadd.f32 %v3150_v43, %v2982_v51 }
0x1108   :  { %3010 = vst.msk [vmem:[%s5207_s17 + $0x78] sm:$0xff] %vm2994_vm3, %v2991_v59 }
0x1109   :  { %3008 = vst.msk [vmem:[%s5207_s17 + $0x68] sm:$0xff] %vm2994_vm3, %v2983_v52 }
0x110a   :  { %4006 = dma.done.wait [#allocation3], 256  }
0x110b   :  { %4007 = vsyncadd [#allocation3], 4294967040 }
0x110c   :  { %3030 = vsyncpa [#allocation3], 1 }

</bundles_post_ra>
